<compile_context>
chip_gen: v7x
topology: tpu7x:2x2x1
jax: 0.10.0
libtpu: 0.0.40
codegen_flags: <defaults>
</compile_context>

<pallas_src>
import jax
import jax.numpy as jnp
from jax import lax
from jax.experimental import pallas as pl
from jax.experimental.pallas import tpu as pltpu

# ----------------------------- toy configuration ----------------------------
B = 2            # batch (= num_class * num_low_desc)
S = 8            # sequence length
D = 32           # hidden size
H = 2            # attention heads
HD = D // H      # head dim
FF = 4 * D       # MLP intermediate
L = 3            # encoder layers (layers 1..L-1 get prompt injection)
N_TPRO = 2       # universal (global) prompt tokens per layer
N_HIGH = 2       # instance (local) prompt tokens per layer
PROJ = 32        # text projection dim
EPS = 1e-5       # CLIP LayerNorm eps

# On v6e/v7x set both to jnp.bfloat16 (MXU-native operands, half the weight
# DMA bytes / VMEM footprint).  f32 here keeps the toy check tight.
MATMUL_DT = jnp.float32     # matmul operand dtype inside the kernel
WEIGHT_DT = jnp.float32     # storage dtype of the streamed weight matrices


def _layernorm(x, w, b):
    mu = jnp.mean(x, axis=-1, keepdims=True)
    var = jnp.mean(jnp.square(x - mu), axis=-1, keepdims=True)
    return (x - mu) * lax.rsqrt(var + EPS) * w + b


# -----------------------------------------------------------------------------
# Fused kernel: all L CLIP encoder layers + prompt injection + final head.
# Grid = (L,), sequential; hidden state lives in VMEM scratch across layers.
# -----------------------------------------------------------------------------
def encoder_stack_kernel(
    # scalar prefetch (SMEM)
    eot_ref,
    # tensor inputs
    x0_ref, mask_ref, puni_ref, pins_ref,
    ln1w_ref, ln1b_ref, qkvw_ref, qkvb_ref, ow_ref, ob_ref,
    ln2w_ref, ln2b_ref, f1w_ref, f1b_ref, f2w_ref, f2b_ref,
    flnw_ref, flnb_ref, projw_ref,
    # output
    out_ref,
    # scratch (persists across the layer grid)
    hid_ref, pooled_ref,
):
    layer = pl.program_id(0)
    last = pl.num_programs(0) - 1

    # ---- layer 0: load the embedded prompt tokens into the resident state
    @pl.when(layer == 0)
    def _():
        hid_ref[...] = x0_ref[...].astype(jnp.float32)

    # ---- layers > 0: in-place prompt injection [prefix | ctx_g | ctx_l | suffix]
    # Vectorized across the batch: two small static-slice stores, no per-b loop.
    @pl.when(layer > 0)
    def _():
        ctx_g = puni_ref[0].astype(jnp.float32)                    # (N_TPRO, D)
        hid_ref[:, 1:1 + N_TPRO, :] = jnp.broadcast_to(ctx_g[None], (B, N_TPRO, D))
        hid_ref[:, 1 + N_TPRO:1 + N_TPRO + N_HIGH, :] = (
            pins_ref[0].astype(jnp.float32))                        # (B, N_HIGH, D)

    x3 = hid_ref[...]                       # (B, S, D) residual stream
    x = x3.reshape(B * S, D)                # S multiple of 8 -> free reshape

    # ---- self-attention block -------------------------------------------------
    hn = _layernorm(x, ln1w_ref[0], ln1b_ref[0])
    # fused QKV projection; 1/sqrt(head_dim) already folded into the Q slices
    qkv = jnp.dot(hn.astype(MATMUL_DT), qkvw_ref[0].astype(MATMUL_DT),
                  preferred_element_type=jnp.float32) + qkvb_ref[0]   # (B*S, 3D)
    qkv3 = qkv.reshape(B, S, 3 * D)
    mask = mask_ref[...]                    # (B, S, S) additive mask
    ow = ow_ref[0]                          # (D, D)

    # Batched over B; static loop over heads only.  The output projection is
    # accumulated per head so every MXU output is D lanes wide (no HD-wide
    # masked stores, no attn_buf scratch round-trip).
    attn_out = jnp.zeros((B * S, D), jnp.float32)
    for hh in range(H):
        c0 = hh * HD
        qh = qkv3[:, :, c0:c0 + HD]
        kh = qkv3[:, :, D + c0:D + c0 + HD]
        vh = qkv3[:, :, 2 * D + c0:2 * D + c0 + HD]
        s = jnp.einsum('bqd,bkd->bqk', qh.astype(MATMUL_DT), kh.astype(MATMUL_DT),
                       preferred_element_type=jnp.float32) + mask      # (B, S, S)
        s = s - jnp.max(s, axis=-1, keepdims=True)
        p = jnp.exp(s)
        p = p * pl.reciprocal(jnp.sum(p, axis=-1, keepdims=True), approx=True)
        ah = jnp.einsum('bqk,bkd->bqd', p.astype(MATMUL_DT), vh.astype(MATMUL_DT),
                        preferred_element_type=jnp.float32)            # (B, S, HD)
        attn_out = attn_out + jnp.dot(
            ah.reshape(B * S, HD).astype(MATMUL_DT),
            ow[c0:c0 + HD, :].astype(MATMUL_DT),
            preferred_element_type=jnp.float32)                        # (B*S, D)

    x = x + attn_out + ob_ref[0]

    # ---- MLP block (quick_gelu) -------------------------------------------------
    hn2 = _layernorm(x, ln2w_ref[0], ln2b_ref[0])
    m = jnp.dot(hn2.astype(MATMUL_DT), f1w_ref[0].astype(MATMUL_DT),
                preferred_element_type=jnp.float32) + f1b_ref[0]
    m = m * jax.nn.sigmoid(1.702 * m)
    m = jnp.dot(m.astype(MATMUL_DT), f2w_ref[0].astype(MATMUL_DT),
                preferred_element_type=jnp.float32) + f2b_ref[0]
    x = x + m
    hid_ref[...] = x.reshape(B, S, D)

    # ---- fused head on the last layer: eot gather + final LN + text_projection
    @pl.when(layer == last)
    def _():
        for b in range(B):   # TODO(synk): switch to lax.fori_loop at large B
            pooled_ref[b:b + 1, :] = hid_ref[b, pl.ds(eot_ref[b], 1), :]
        pooled = _layernorm(pooled_ref[...], flnw_ref[...], flnb_ref[...])
        out_ref[...] = jnp.dot(pooled.astype(MATMUL_DT),
                               projw_ref[...].astype(MATMUL_DT),
                               preferred_element_type=jnp.float32)


# -----------------------------------------------------------------------------
# One-time parameter prep (OUTSIDE the jitted forward, per perf review):
# fold the attention scale into Q (weight AND bias), fuse Q/K/V, cast the
# streamed weight matrices to WEIGHT_DT.
# -----------------------------------------------------------------------------
def prepare_params(params):
    scale = HD ** -0.5
    qkv_w = jnp.concatenate(
        [params["q_w"] * scale, params["k_w"], params["v_w"]], axis=-1)   # (L, D, 3D)
    qkv_b = jnp.concatenate(
        [params["q_b"] * scale, params["k_b"], params["v_b"]], axis=-1)   # (L, 1, 3D)
    return {
        "ln1_w": params["ln1_w"], "ln1_b": params["ln1_b"],
        "qkv_w": qkv_w.astype(WEIGHT_DT), "qkv_b": qkv_b.astype(jnp.float32),
        "o_w": params["o_w"].astype(WEIGHT_DT), "o_b": params["o_b"],
        "ln2_w": params["ln2_w"], "ln2_b": params["ln2_b"],
        "fc1_w": params["fc1_w"].astype(WEIGHT_DT), "fc1_b": params["fc1_b"],
        "fc2_w": params["fc2_w"].astype(WEIGHT_DT), "fc2_b": params["fc2_b"],
        "fln_w": params["fln_w"], "fln_b": params["fln_b"],
        "proj_w": params["proj_w"].astype(WEIGHT_DT),
    }


# -----------------------------------------------------------------------------
# Wrapper (mirrors TextEncoder.forward signature) — one pallas_call total.
# -----------------------------------------------------------------------------
def text_encoder_forward(x, p_ins, p_uni, tokenized_prompts, attn,
                         causal_attention_mask, prepped,
                         n_tpro=N_TPRO, n_high=N_HIGH):
    Bb, Ss, Dd = x.shape
    assert (Bb, Ss, Dd) == (B, S, D)
    num_layers = prepped["qkv_w"].shape[0]
    proj_dim = prepped["proj_w"].shape[1]

    # --- p_ins reshape / expand (mirrors the PyTorch preamble) ---
    l_, k_, d_ = p_ins.shape
    num_class = k_ // n_high
    rep = Bb // num_class
    pi = p_ins.reshape(l_, num_class, 1, n_high, d_)
    pi = jnp.broadcast_to(pi, (l_, num_class, rep, n_high, d_))
    pi = pi.reshape(l_, num_class * rep, n_high, d_).astype(x.dtype)

    # pad a dummy layer-0 slot so the layer grid can index prompts by layer id
    p_uni_pad = jnp.concatenate(
        [jnp.zeros((1, n_tpro, d_), x.dtype), p_uni.astype(x.dtype)], axis=0)
    p_ins_pad = jnp.concatenate(
        [jnp.zeros((1, Bb, n_high, d_), x.dtype), pi], axis=0)

    # combined additive attention mask (attention_mask + causal), (B, S, S)
    if attn is None:
        attn = jnp.zeros((Bb, 1, Ss, Ss), x.dtype)
    mask = jnp.broadcast_to(attn + causal_attention_mask, (Bb, 1, Ss, Ss))[:, 0]

    # eot token index per row (argmax over tokenized prompts) -> scalar prefetch
    eot = jnp.argmax(tokenized_prompts.astype(jnp.int32), axis=-1).astype(jnp.int32)

    per_layer3 = lambda l, e: (l, 0, 0)
    per_layer4 = lambda l, e: (l, 0, 0, 0)
    const2 = lambda l, e: (0, 0)
    const3 = lambda l, e: (0, 0, 0)

    grid_spec = pltpu.PrefetchScalarGridSpec(
        num_scalar_prefetch=1,
        grid=(num_layers,),
        in_specs=[
            pl.BlockSpec((Bb, Ss, Dd), const3),                          # x0
            pl.BlockSpec((Bb, Ss, Ss), const3),                          # combined mask
            pl.BlockSpec((1, n_tpro, Dd), per_layer3),                   # p_uni (padded)
            pl.BlockSpec((1, Bb, n_high, Dd), per_layer4),               # p_ins (padded)
            pl.BlockSpec((1, 1, Dd), per_layer3),                        # ln1_w
            pl.BlockSpec((1, 1, Dd), per_layer3),                        # ln1_b
            pl.BlockSpec((1, Dd, 3 * Dd), per_layer3),                   # qkv_w
            pl.BlockSpec((1, 1, 3 * Dd), per_layer3),                    # qkv_b
            pl.BlockSpec((1, Dd, Dd), per_layer3),                       # o_w
            pl.BlockSpec((1, 1, Dd), per_layer3),                        # o_b
            pl.BlockSpec((1, 1, Dd), per_layer3),                        # ln2_w
            pl.BlockSpec((1, 1, Dd), per_layer3),                        # ln2_b
            pl.BlockSpec((1, Dd, FF), per_layer3),                       # fc1_w
            pl.BlockSpec((1, 1, FF), per_layer3),                        # fc1_b
            pl.BlockSpec((1, FF, Dd), per_layer3),                       # fc2_w
            pl.BlockSpec((1, 1, Dd), per_layer3),                        # fc2_b
            pl.BlockSpec((1, Dd), const2),                               # final LN w
            pl.BlockSpec((1, Dd), const2),                               # final LN b
            pl.BlockSpec((Dd, proj_dim), const2),                        # text projection
        ],
        out_specs=pl.BlockSpec((Bb, proj_dim), const2),
        scratch_shapes=[
            pltpu.VMEM((Bb, Ss, Dd), jnp.float32),   # resident hidden state
            pltpu.VMEM((Bb, Dd), jnp.float32),       # pooled eot rows
        ],
    )

    return pl.pallas_call(
        encoder_stack_kernel,
        out_shape=jax.ShapeDtypeStruct((Bb, proj_dim), jnp.float32),
        grid_spec=grid_spec,
        compiler_params=pltpu.CompilerParams(
            dimension_semantics=("arbitrary",),   # layers carry state -> sequential
            vmem_limit_bytes=64 * 1024 * 1024,    # raise toward ~96 MiB at CLIP size on v5e/v6e
        ),
    )(eot, x, mask, p_uni_pad, p_ins_pad,
      prepped["ln1_w"], prepped["ln1_b"], prepped["qkv_w"], prepped["qkv_b"],
      prepped["o_w"], prepped["o_b"], prepped["ln2_w"], prepped["ln2_b"],
      prepped["fc1_w"], prepped["fc1_b"], prepped["fc2_w"], prepped["fc2_b"],
      prepped["fln_w"], prepped["fln_b"], prepped["proj_w"])


# -----------------------------------------------------------------------------
# Pure-JAX reference (mirrors the PyTorch module exactly) for correctness check
# -----------------------------------------------------------------------------
def ref_forward(x, p_ins, p_uni, tokenized_prompts, attn, causal, params):
    Bb, Ss, Dd = x.shape
    scale = (Dd // H) ** -0.5
    l_, k_, d_ = p_ins.shape
    num_class = k_ // N_HIGH
    rep = Bb // num_class
    pi = jnp.broadcast_to(p_ins.reshape(l_, num_class, 1, N_HIGH, d_),
                          (l_, num_class, rep, N_HIGH, d_))
    pi = pi.reshape(l_, num_class * rep, N_HIGH, d_)
    eot = jnp.argmax(tokenized_prompts.astype(jnp.int32), axis=-1)

    for li in range(L):
        if li > 0:
            prefix = x[:, :1]
            suffix = x[:, 1 + N_TPRO + N_HIGH:]
            ctx_g = jnp.broadcast_to(p_uni[li - 1][None], (Bb, N_TPRO, Dd))
            ctx_l = pi[li - 1]
            x = jnp.concatenate([prefix, ctx_g, ctx_l, suffix], axis=1)
        res = x
        hn = _layernorm(x, params["ln1_w"][li], params["ln1_b"][li])
        q = (hn @ params["q_w"][li] + params["q_b"][li]) * scale
        k = hn @ params["k_w"][li] + params["k_b"][li]
        v = hn @ params["v_w"][li] + params["v_b"][li]
        q = q.reshape(Bb, Ss, H, HD).transpose(0, 2, 1, 3)
        k = k.reshape(Bb, Ss, H, HD).transpose(0, 2, 1, 3)
        v = v.reshape(Bb, Ss, H, HD).transpose(0, 2, 1, 3)
        s = jnp.einsum("bhqd,bhkd->bhqk", q, k) + causal + attn
        p = jax.nn.softmax(s, axis=-1)
        a = jnp.einsum("bhqk,bhkd->bhqd", p, v).transpose(0, 2, 1, 3).reshape(Bb, Ss, Dd)
        x = res + (a @ params["o_w"][li] + params["o_b"][li])
        res = x
        hn = _layernorm(x, params["ln2_w"][li], params["ln2_b"][li])
        m = hn @ params["fc1_w"][li] + params["fc1_b"][li]
        m = m * jax.nn.sigmoid(1.702 * m)
        x = res + (m @ params["fc2_w"][li] + params["fc2_b"][li])

    x = _layernorm(x, params["fln_w"], params["fln_b"])
    pooled = x[jnp.arange(Bb), eot]
    return pooled @ params["proj_w"]


# -----------------------------------------------------------------------------
# Deterministic synthetic parameters (per-layer weights stacked along L)
# -----------------------------------------------------------------------------
def init_params(key):
    std = 0.02
    ks = jax.random.split(key, 19)
    n = lambda k, shape: jax.random.normal(k, shape, jnp.float32) * std
    return {
        "ln1_w": 1.0 + 0.1 * jax.random.normal(ks[0], (L, 1, D), jnp.float32),
        "ln1_b": 0.1 * jax.random.normal(ks[1], (L, 1, D), jnp.float32),
        "q_w": n(ks[2], (L, D, D)), "q_b": n(ks[3], (L, 1, D)),
        "k_w": n(ks[4], (L, D, D)), "k_b": n(ks[5], (L, 1, D)),
        "v_w": n(ks[6], (L, D, D)), "v_b": n(ks[7], (L, 1, D)),
        "o_w": n(ks[8], (L, D, D)), "o_b": n(ks[9], (L, 1, D)),
        "ln2_w": 1.0 + 0.1 * jax.random.normal(ks[10], (L, 1, D), jnp.float32),
        "ln2_b": 0.1 * jax.random.normal(ks[11], (L, 1, D), jnp.float32),
        "fc1_w": n(ks[12], (L, D, FF)), "fc1_b": n(ks[13], (L, 1, FF)),
        "fc2_w": n(ks[14], (L, FF, D)), "fc2_b": n(ks[15], (L, 1, D)),
        "fln_w": 1.0 + 0.1 * jax.random.normal(ks[16], (1, D), jnp.float32),
        "fln_b": 0.1 * jax.random.normal(ks[17], (1, D), jnp.float32),
        "proj_w": n(ks[18], (D, PROJ)),
    }


if __name__ == "__main__":
    key = jax.random.PRNGKey(0)
    kp, kx, ki, ku, kt = jax.random.split(key, 5)
    params = init_params(kp)

    # One-time weight prep OUTSIDE the jitted forward (no per-call re-concat).
    prepped = jax.tree_util.tree_map(jax.device_put, prepare_params(params))

    # x: already-embedded prompt tokens (token + positional), as fed to the module
    x = jax.random.normal(kx, (B, S, D), jnp.float32) * 0.02
    num_class = 1                                  # exercises the expand/broadcast path
    p_ins = jax.random.normal(ki, (L - 1, num_class * N_HIGH, D), jnp.float32) * 0.02
    p_uni = jax.random.normal(ku, (L - 1, N_TPRO, D), jnp.float32) * 0.02

    # tokenized prompts: argmax marks the EOT position of each row
    tok = jax.random.randint(kt, (B, S), 1, 100, dtype=jnp.int32)
    eot_pos = jnp.array([S - 1, S - 2], dtype=jnp.int32)[:B]
    tok = tok.at[jnp.arange(B), eot_pos].set(1000)

    neg = jnp.finfo(jnp.float32).min
    causal_attention_mask = jnp.triu(jnp.full((S, S), neg, jnp.float32), k=1)[None, None]
    attn = jnp.zeros((B, 1, S, S), jnp.float32)    # HF-style additive attention mask

    fwd = jax.jit(text_encoder_forward)
    out = jax.block_until_ready(
        fwd(x, p_ins, p_uni, tok, attn, causal_attention_mask, prepped))

    ref = ref_forward(x, p_ins, p_uni, tok, attn, causal_attention_mask, params)
    assert out.shape == (B, PROJ), out.shape
    err = float(jnp.max(jnp.abs(out - ref)))
    assert jnp.allclose(out, ref, atol=3e-3, rtol=3e-3), f"max|diff|={err}"

    print("KERNEL_OK")
</pallas_src>

<mosaic_0001>
module attributes {stable_mosaic.version = 11 : i64} {
  func.func @encoder_stack_kernel(%arg0: i32, %arg1: memref<2xi32, #tpu.memory_space<smem>>, %arg2: memref<2x8x32xf32, #tpu.memory_space<vmem>>, %arg3: memref<2x8x8xf32, #tpu.memory_space<vmem>>, %arg4: memref<1x2x32xf32, #tpu.memory_space<vmem>>, %arg5: memref<1x2x2x32xf32, #tpu.memory_space<vmem>>, %arg6: memref<1x1x32xf32, #tpu.memory_space<vmem>>, %arg7: memref<1x1x32xf32, #tpu.memory_space<vmem>>, %arg8: memref<1x32x96xf32, #tpu.memory_space<vmem>>, %arg9: memref<1x1x96xf32, #tpu.memory_space<vmem>>, %arg10: memref<1x32x32xf32, #tpu.memory_space<vmem>>, %arg11: memref<1x1x32xf32, #tpu.memory_space<vmem>>, %arg12: memref<1x1x32xf32, #tpu.memory_space<vmem>>, %arg13: memref<1x1x32xf32, #tpu.memory_space<vmem>>, %arg14: memref<1x32x128xf32, #tpu.memory_space<vmem>>, %arg15: memref<1x1x128xf32, #tpu.memory_space<vmem>>, %arg16: memref<1x128x32xf32, #tpu.memory_space<vmem>>, %arg17: memref<1x1x32xf32, #tpu.memory_space<vmem>>, %arg18: memref<1x32xf32, #tpu.memory_space<vmem>>, %arg19: memref<1x32xf32, #tpu.memory_space<vmem>>, %arg20: memref<32x32xf32, #tpu.memory_space<vmem>>, %arg21: memref<2x32xf32, #tpu.memory_space<vmem>>, %arg22: memref<2x8x32xf32, #tpu.memory_space<vmem>>, %arg23: memref<2x32xf32, #tpu.memory_space<vmem>>) attributes {dimension_semantics = [#tpu.dimension_semantics<arbitrary>], iteration_bounds = array<i64: 3>, scalar_prefetch = 1 : i64, scratch_operands = 2 : i64, tpu.core_type = #tpu.core_type<tc>, window_params = [{pipeline_mode = #tpu.pipeline_mode<synchronous>, transform_indices = @transform_0, window_bounds = array<i64: 2, 8, 32>}, {pipeline_mode = #tpu.pipeline_mode<synchronous>, transform_indices = @transform_1, window_bounds = array<i64: 2, 8, 8>}, {transform_indices = @transform_2, window_bounds = array<i64: 1, 2, 32>}, {transform_indices = @transform_3, window_bounds = array<i64: 1, 2, 2, 32>}, {transform_indices = @transform_4, window_bounds = array<i64: 1, 1, 32>}, {transform_indices = @transform_5, window_bounds = array<i64: 1, 1, 32>}, {transform_indices = @transform_6, window_bounds = array<i64: 1, 32, 96>}, {transform_indices = @transform_7, window_bounds = array<i64: 1, 1, 96>}, {transform_indices = @transform_8, window_bounds = array<i64: 1, 32, 32>}, {transform_indices = @transform_9, window_bounds = array<i64: 1, 1, 32>}, {transform_indices = @transform_10, window_bounds = array<i64: 1, 1, 32>}, {transform_indices = @transform_11, window_bounds = array<i64: 1, 1, 32>}, {transform_indices = @transform_12, window_bounds = array<i64: 1, 32, 128>}, {transform_indices = @transform_13, window_bounds = array<i64: 1, 1, 128>}, {transform_indices = @transform_14, window_bounds = array<i64: 1, 128, 32>}, {transform_indices = @transform_15, window_bounds = array<i64: 1, 1, 32>}, {pipeline_mode = #tpu.pipeline_mode<synchronous>, transform_indices = @transform_16, window_bounds = array<i64: 1, 32>}, {pipeline_mode = #tpu.pipeline_mode<synchronous>, transform_indices = @transform_17, window_bounds = array<i64: 1, 32>}, {pipeline_mode = #tpu.pipeline_mode<synchronous>, transform_indices = @transform_18, window_bounds = array<i64: 32, 32>}, {pipeline_mode = #tpu.pipeline_mode<synchronous>, transform_indices = @transform_19, window_bounds = array<i64: 2, 32>}]} {
    %c0_i32 = arith.constant 0 : i32
    %0 = arith.cmpi eq, %arg0, %c0_i32 : i32
    %1 = arith.extui %0 : i1 to i32
    %c0_i32_0 = arith.constant 0 : i32
    %2 = arith.cmpi ne, %1, %c0_i32_0 : i32
    scf.if %2 {
      %c0_73 = arith.constant 0 : index
      %c0_74 = arith.constant 0 : index
      %c0_75 = arith.constant 0 : index
      %145 = vector.load %arg2[%c0_73, %c0_74, %c0_75] : memref<2x8x32xf32, #tpu.memory_space<vmem>>, vector<2x8x32xf32>
      %c0_76 = arith.constant 0 : index
      %c0_77 = arith.constant 0 : index
      %c0_78 = arith.constant 0 : index
      %146 = vector.load %arg22[%c0_76, %c0_77, %c0_78] : memref<2x8x32xf32, #tpu.memory_space<vmem>>, vector<2x8x32xf32>
      tpu.vector_store %arg22[%c0_76, %c0_77, %c0_78], %145 {strides = array<i32>} : memref<2x8x32xf32, #tpu.memory_space<vmem>>, vector<2x8x32xf32>,
    } else {
    }
    %c0_i32_1 = arith.constant 0 : i32
    %3 = arith.cmpi sgt, %arg0, %c0_i32_1 : i32
    %4 = arith.extui %3 : i1 to i32
    %c0_i32_2 = arith.constant 0 : i32
    %5 = arith.cmpi ne, %4, %c0_i32_2 : i32
    scf.if %5 {
      %c0_73 = arith.constant 0 : index
      %c0_74 = arith.constant 0 : index
      %c0_75 = arith.constant 0 : index
      %145 = vector.load %arg4[%c0_73, %c0_74, %c0_75] : memref<1x2x32xf32, #tpu.memory_space<vmem>>, vector<1x2x32xf32>
      %146 = vector.shape_cast %145 : vector<1x2x32xf32> to vector<2x32xf32>
      %147 = vector.shape_cast %146 : vector<2x32xf32> to vector<1x2x32xf32>
      %148 = vector.shape_cast %147 : vector<1x2x32xf32> to vector<1x2x32xf32>
      %149 = vector.broadcast %148 : vector<1x2x32xf32> to vector<2x2x32xf32>
      %c0_76 = arith.constant 0 : index
      %c1 = arith.constant 1 : index
      %c0_77 = arith.constant 0 : index
      %150 = vector.load %arg22[%c0_76, %c1, %c0_77] : memref<2x8x32xf32, #tpu.memory_space<vmem>>, vector<2x2x32xf32>
      tpu.vector_store %arg22[%c0_76, %c1, %c0_77], %149 {strides = array<i32>} : memref<2x8x32xf32, #tpu.memory_space<vmem>>, vector<2x2x32xf32>,
      %c0_78 = arith.constant 0 : index
      %c0_79 = arith.constant 0 : index
      %c0_80 = arith.constant 0 : index
      %c0_81 = arith.constant 0 : index
      %151 = vector.load %arg5[%c0_78, %c0_79, %c0_80, %c0_81] : memref<1x2x2x32xf32, #tpu.memory_space<vmem>>, vector<1x2x2x32xf32>
      %152 = vector.shape_cast %151 : vector<1x2x2x32xf32> to vector<2x2x32xf32>
      %c0_82 = arith.constant 0 : index
      %c3 = arith.constant 3 : index
      %c0_83 = arith.constant 0 : index
      %153 = vector.load %arg22[%c0_82, %c3, %c0_83] : memref<2x8x32xf32, #tpu.memory_space<vmem>>, vector<2x2x32xf32>
      tpu.vector_store %arg22[%c0_82, %c3, %c0_83], %152 {strides = array<i32>} : memref<2x8x32xf32, #tpu.memory_space<vmem>>, vector<2x2x32xf32>,
    } else {
    }
    %c0 = arith.constant 0 : index
    %c0_3 = arith.constant 0 : index
    %c0_4 = arith.constant 0 : index
    %6 = vector.load %arg22[%c0, %c0_3, %c0_4] : memref<2x8x32xf32, #tpu.memory_space<vmem>>, vector<2x8x32xf32>
    %7 = vector.shape_cast %6 : vector<2x8x32xf32> to vector<16x32xf32>
    %c0_5 = arith.constant 0 : index
    %c0_6 = arith.constant 0 : index
    %c0_7 = arith.constant 0 : index
    %8 = vector.load %arg6[%c0_5, %c0_6, %c0_7] : memref<1x1x32xf32, #tpu.memory_space<vmem>>, vector<1x1x32xf32>
    %9 = vector.shape_cast %8 : vector<1x1x32xf32> to vector<1x32xf32>
    %c0_8 = arith.constant 0 : index
    %c0_9 = arith.constant 0 : index
    %c0_10 = arith.constant 0 : index
    %10 = vector.load %arg7[%c0_8, %c0_9, %c0_10] : memref<1x1x32xf32, #tpu.memory_space<vmem>>, vector<1x1x32xf32>
    %11 = vector.shape_cast %10 : vector<1x1x32xf32> to vector<1x32xf32>
    %cst = arith.constant dense<0.000000e+00> : vector<16xf32>
    %12 = vector.multi_reduction <add>, %7, %cst [1] : vector<16x32xf32> to vector<16xf32>
    %13 = vector.shape_cast %12 : vector<16xf32> to vector<16x1xf32>
    %cst_11 = arith.constant 3.200000e+01 : f32
    %14 = vector.broadcast %cst_11 : f32 to vector<16x1xf32>
    %15 = arith.divf %13, %14 : vector<16x1xf32>
    %16 = vector.broadcast %15 : vector<16x1xf32> to vector<16x32xf32>
    %17 = arith.subf %7, %16 : vector<16x32xf32>
    %18 = arith.mulf %17, %17 : vector<16x32xf32>
    %cst_12 = arith.constant dense<0.000000e+00> : vector<16xf32>
    %19 = vector.multi_reduction <add>, %18, %cst_12 [1] : vector<16x32xf32> to vector<16xf32>
    %20 = vector.shape_cast %19 : vector<16xf32> to vector<16x1xf32>
    %cst_13 = arith.constant 3.200000e+01 : f32
    %21 = vector.broadcast %cst_13 : f32 to vector<16x1xf32>
    %22 = arith.divf %20, %21 : vector<16x1xf32>
    %23 = vector.broadcast %15 : vector<16x1xf32> to vector<16x32xf32>
    %24 = arith.subf %7, %23 : vector<16x32xf32>
    %cst_14 = arith.constant 9.99999974E-6 : f32
    %25 = vector.broadcast %cst_14 : f32 to vector<16x1xf32>
    %26 = arith.addf %22, %25 : vector<16x1xf32>
    %27 = math.rsqrt %26 : vector<16x1xf32>
    %28 = vector.broadcast %27 : vector<16x1xf32> to vector<16x32xf32>
    %29 = arith.mulf %24, %28 : vector<16x32xf32>
    %30 = vector.broadcast %9 : vector<1x32xf32> to vector<16x32xf32>
    %31 = arith.mulf %29, %30 : vector<16x32xf32>
    %32 = vector.broadcast %11 : vector<1x32xf32> to vector<16x32xf32>
    %33 = arith.addf %31, %32 : vector<16x32xf32>
    %c0_15 = arith.constant 0 : index
    %c0_16 = arith.constant 0 : index
    %c0_17 = arith.constant 0 : index
    %34 = vector.load %arg8[%c0_15, %c0_16, %c0_17] : memref<1x32x96xf32, #tpu.memory_space<vmem>>, vector<1x32x96xf32>
    %35 = vector.shape_cast %34 : vector<1x32x96xf32> to vector<32x96xf32>
    %cst_18 = arith.constant dense<0.000000e+00> : vector<16x96xf32>
    %36 = tpu.matmul %33, %35, %cst_18 {dimension_numbers = #tpu.dot_dimension_numbers<[1], [0], [0], [1], [0, 0, 1, 1], [], []>} : vector<16x32xf32>, vector<32x96xf32>, vector<16x96xf32> -> vector<16x96xf32>
    %c0_19 = arith.constant 0 : index
    %c0_20 = arith.constant 0 : index
    %c0_21 = arith.constant 0 : index
    %37 = vector.load %arg9[%c0_19, %c0_20, %c0_21] : memref<1x1x96xf32, #tpu.memory_space<vmem>>, vector<1x1x96xf32>
    %38 = vector.shape_cast %37 : vector<1x1x96xf32> to vector<1x96xf32>
    %39 = vector.broadcast %38 : vector<1x96xf32> to vector<16x96xf32>
    %40 = arith.addf %36, %39 : vector<16x96xf32>
    %41 = vector.shape_cast %40 : vector<16x96xf32> to vector<2x8x96xf32>
    %c0_22 = arith.constant 0 : index
    %c0_23 = arith.constant 0 : index
    %c0_24 = arith.constant 0 : index
    %42 = vector.load %arg3[%c0_22, %c0_23, %c0_24] : memref<2x8x8xf32, #tpu.memory_space<vmem>>, vector<2x8x8xf32>
    %c0_25 = arith.constant 0 : index
    %c0_26 = arith.constant 0 : index
    %c0_27 = arith.constant 0 : index
    %43 = vector.load %arg10[%c0_25, %c0_26, %c0_27] : memref<1x32x32xf32, #tpu.memory_space<vmem>>, vector<1x32x32xf32>
    %44 = vector.shape_cast %43 : vector<1x32x32xf32> to vector<32x32xf32>
    %cst_28 = arith.constant 0.000000e+00 : f32
    %45 = vector.broadcast %cst_28 : f32 to vector<16x32xf32>
    %46 = vector.extract_strided_slice %41 {offsets = [0, 0, 0], sizes = [2, 8, 16], strides = [1, 1, 1]} : vector<2x8x96xf32> to vector<2x8x16xf32>
    %47 = vector.extract_strided_slice %41 {offsets = [0, 0, 32], sizes = [2, 8, 16], strides = [1, 1, 1]} : vector<2x8x96xf32> to vector<2x8x16xf32>
    %48 = vector.extract_strided_slice %41 {offsets = [0, 0, 64], sizes = [2, 8, 16], strides = [1, 1, 1]} : vector<2x8x96xf32> to vector<2x8x16xf32>
    "tpu.trace_start"() <{level = 10 : i32, message = "bqd,bkd->bqk"}> : () -> ()
    %cst_29 = arith.constant dense<0.000000e+00> : vector<2x8x8xf32>
    %49 = tpu.matmul %46, %47, %cst_29 {dimension_numbers = #tpu.dot_dimension_numbers<[2], [2], [1], [1], [0, 0, 0, 1, 1, 1], [0], [0]>} : vector<2x8x16xf32>, vector<2x8x16xf32>, vector<2x8x8xf32> -> vector<2x8x8xf32>
    "tpu.trace_stop"() : () -> ()
    %50 = arith.addf %49, %42 : vector<2x8x8xf32>
    %cst_30 = arith.constant dense<0xFF800000> : vector<2x8xf32>
    %51 = vector.multi_reduction <maximumf>, %50, %cst_30 [2] : vector<2x8x8xf32> to vector<2x8xf32>
    %52 = vector.shape_cast %51 : vector<2x8xf32> to vector<2x8x1xf32>
    %53 = vector.broadcast %52 : vector<2x8x1xf32> to vector<2x8x8xf32>
    %54 = arith.subf %50, %53 : vector<2x8x8xf32>
    %55 = math.exp %54 : vector<2x8x8xf32>
    %cst_31 = arith.constant dense<0.000000e+00> : vector<2x8xf32>
    %56 = vector.multi_reduction <add>, %55, %cst_31 [2] : vector<2x8x8xf32> to vector<2x8xf32>
    %57 = vector.shape_cast %56 : vector<2x8xf32> to vector<2x8x1xf32>
    %58 = tpu.reciprocal %57 {approx = true} : vector<2x8x1xf32> -> vector<2x8x1xf32>
    %59 = vector.broadcast %58 : vector<2x8x1xf32> to vector<2x8x8xf32>
    %60 = arith.mulf %55, %59 : vector<2x8x8xf32>
    "tpu.trace_start"() <{level = 10 : i32, message = "bqk,bkd->bqd"}> : () -> ()
    %cst_32 = arith.constant dense<0.000000e+00> : vector<2x8x16xf32>
    %61 = tpu.matmul %60, %48, %cst_32 {dimension_numbers = #tpu.dot_dimension_numbers<[2], [1], [1], [2], [0, 0, 0, 1, 1, 2], [0], [0]>} : vector<2x8x8xf32>, vector<2x8x16xf32>, vector<2x8x16xf32> -> vector<2x8x16xf32>
    "tpu.trace_stop"() : () -> ()
    %62 = vector.shape_cast %61 : vector<2x8x16xf32> to vector<16x16xf32>
    %63 = vector.extract_strided_slice %44 {offsets = [0, 0], sizes = [16, 32], strides = [1, 1]} : vector<32x32xf32> to vector<16x32xf32>
    %cst_33 = arith.constant dense<0.000000e+00> : vector<16x32xf32>
    %64 = tpu.matmul %62, %63, %cst_33 {dimension_numbers = #tpu.dot_dimension_numbers<[1], [0], [0], [1], [0, 0, 1, 1], [], []>} : vector<16x16xf32>, vector<16x32xf32>, vector<16x32xf32> -> vector<16x32xf32>
    %65 = arith.addf %45, %64 : vector<16x32xf32>
    %66 = vector.extract_strided_slice %41 {offsets = [0, 0, 16], sizes = [2, 8, 16], strides = [1, 1, 1]} : vector<2x8x96xf32> to vector<2x8x16xf32>
    %67 = vector.extract_strided_slice %41 {offsets = [0, 0, 48], sizes = [2, 8, 16], strides = [1, 1, 1]} : vector<2x8x96xf32> to vector<2x8x16xf32>
    %68 = vector.extract_strided_slice %41 {offsets = [0, 0, 80], sizes = [2, 8, 16], strides = [1, 1, 1]} : vector<2x8x96xf32> to vector<2x8x16xf32>
    "tpu.trace_start"() <{level = 10 : i32, message = "bqd,bkd->bqk"}> : () -> ()
    %cst_34 = arith.constant dense<0.000000e+00> : vector<2x8x8xf32>
    %69 = tpu.matmul %66, %67, %cst_34 {dimension_numbers = #tpu.dot_dimension_numbers<[2], [2], [1], [1], [0, 0, 0, 1, 1, 1], [0], [0]>} : vector<2x8x16xf32>, vector<2x8x16xf32>, vector<2x8x8xf32> -> vector<2x8x8xf32>
    "tpu.trace_stop"() : () -> ()
    %70 = arith.addf %69, %42 : vector<2x8x8xf32>
    %cst_35 = arith.constant dense<0xFF800000> : vector<2x8xf32>
    %71 = vector.multi_reduction <maximumf>, %70, %cst_35 [2] : vector<2x8x8xf32> to vector<2x8xf32>
    %72 = vector.shape_cast %71 : vector<2x8xf32> to vector<2x8x1xf32>
    %73 = vector.broadcast %72 : vector<2x8x1xf32> to vector<2x8x8xf32>
    %74 = arith.subf %70, %73 : vector<2x8x8xf32>
    %75 = math.exp %74 : vector<2x8x8xf32>
    %cst_36 = arith.constant dense<0.000000e+00> : vector<2x8xf32>
    %76 = vector.multi_reduction <add>, %75, %cst_36 [2] : vector<2x8x8xf32> to vector<2x8xf32>
    %77 = vector.shape_cast %76 : vector<2x8xf32> to vector<2x8x1xf32>
    %78 = tpu.reciprocal %77 {approx = true} : vector<2x8x1xf32> -> vector<2x8x1xf32>
    %79 = vector.broadcast %78 : vector<2x8x1xf32> to vector<2x8x8xf32>
    %80 = arith.mulf %75, %79 : vector<2x8x8xf32>
    "tpu.trace_start"() <{level = 10 : i32, message = "bqk,bkd->bqd"}> : () -> ()
    %cst_37 = arith.constant dense<0.000000e+00> : vector<2x8x16xf32>
    %81 = tpu.matmul %80, %68, %cst_37 {dimension_numbers = #tpu.dot_dimension_numbers<[2], [1], [1], [2], [0, 0, 0, 1, 1, 2], [0], [0]>} : vector<2x8x8xf32>, vector<2x8x16xf32>, vector<2x8x16xf32> -> vector<2x8x16xf32>
    "tpu.trace_stop"() : () -> ()
    %82 = vector.shape_cast %81 : vector<2x8x16xf32> to vector<16x16xf32>
    %83 = vector.extract_strided_slice %44 {offsets = [16, 0], sizes = [16, 32], strides = [1, 1]} : vector<32x32xf32> to vector<16x32xf32>
    %cst_38 = arith.constant dense<0.000000e+00> : vector<16x32xf32>
    %84 = tpu.matmul %82, %83, %cst_38 {dimension_numbers = #tpu.dot_dimension_numbers<[1], [0], [0], [1], [0, 0, 1, 1], [], []>} : vector<16x16xf32>, vector<16x32xf32>, vector<16x32xf32> -> vector<16x32xf32>
    %85 = arith.addf %65, %84 : vector<16x32xf32>
    %86 = arith.addf %7, %85 : vector<16x32xf32>
    %c0_39 = arith.constant 0 : index
    %c0_40 = arith.constant 0 : index
    %c0_41 = arith.constant 0 : index
    %87 = vector.load %arg11[%c0_39, %c0_40, %c0_41] : memref<1x1x32xf32, #tpu.memory_space<vmem>>, vector<1x1x32xf32>
    %88 = vector.shape_cast %87 : vector<1x1x32xf32> to vector<1x32xf32>
    %89 = vector.broadcast %88 : vector<1x32xf32> to vector<16x32xf32>
    %90 = arith.addf %86, %89 : vector<16x32xf32>
    %c0_42 = arith.constant 0 : index
    %c0_43 = arith.constant 0 : index
    %c0_44 = arith.constant 0 : index
    %91 = vector.load %arg12[%c0_42, %c0_43, %c0_44] : memref<1x1x32xf32, #tpu.memory_space<vmem>>, vector<1x1x32xf32>
    %92 = vector.shape_cast %91 : vector<1x1x32xf32> to vector<1x32xf32>
    %c0_45 = arith.constant 0 : index
    %c0_46 = arith.constant 0 : index
    %c0_47 = arith.constant 0 : index
    %93 = vector.load %arg13[%c0_45, %c0_46, %c0_47] : memref<1x1x32xf32, #tpu.memory_space<vmem>>, vector<1x1x32xf32>
    %94 = vector.shape_cast %93 : vector<1x1x32xf32> to vector<1x32xf32>
    %cst_48 = arith.constant dense<0.000000e+00> : vector<16xf32>
    %95 = vector.multi_reduction <add>, %90, %cst_48 [1] : vector<16x32xf32> to vector<16xf32>
    %96 = vector.shape_cast %95 : vector<16xf32> to vector<16x1xf32>
    %cst_49 = arith.constant 3.200000e+01 : f32
    %97 = vector.broadcast %cst_49 : f32 to vector<16x1xf32>
    %98 = arith.divf %96, %97 : vector<16x1xf32>
    %99 = vector.broadcast %98 : vector<16x1xf32> to vector<16x32xf32>
    %100 = arith.subf %90, %99 : vector<16x32xf32>
    %101 = arith.mulf %100, %100 : vector<16x32xf32>
    %cst_50 = arith.constant dense<0.000000e+00> : vector<16xf32>
    %102 = vector.multi_reduction <add>, %101, %cst_50 [1] : vector<16x32xf32> to vector<16xf32>
    %103 = vector.shape_cast %102 : vector<16xf32> to vector<16x1xf32>
    %cst_51 = arith.constant 3.200000e+01 : f32
    %104 = vector.broadcast %cst_51 : f32 to vector<16x1xf32>
    %105 = arith.divf %103, %104 : vector<16x1xf32>
    %106 = vector.broadcast %98 : vector<16x1xf32> to vector<16x32xf32>
    %107 = arith.subf %90, %106 : vector<16x32xf32>
    %cst_52 = arith.constant 9.99999974E-6 : f32
    %108 = vector.broadcast %cst_52 : f32 to vector<16x1xf32>
    %109 = arith.addf %105, %108 : vector<16x1xf32>
    %110 = math.rsqrt %109 : vector<16x1xf32>
    %111 = vector.broadcast %110 : vector<16x1xf32> to vector<16x32xf32>
    %112 = arith.mulf %107, %111 : vector<16x32xf32>
    %113 = vector.broadcast %92 : vector<1x32xf32> to vector<16x32xf32>
    %114 = arith.mulf %112, %113 : vector<16x32xf32>
    %115 = vector.broadcast %94 : vector<1x32xf32> to vector<16x32xf32>
    %116 = arith.addf %114, %115 : vector<16x32xf32>
    %c0_53 = arith.constant 0 : index
    %c0_54 = arith.constant 0 : index
    %c0_55 = arith.constant 0 : index
    %117 = vector.load %arg14[%c0_53, %c0_54, %c0_55] : memref<1x32x128xf32, #tpu.memory_space<vmem>>, vector<1x32x128xf32>
    %118 = vector.shape_cast %117 : vector<1x32x128xf32> to vector<32x128xf32>
    %cst_56 = arith.constant dense<0.000000e+00> : vector<16x128xf32>
    %119 = tpu.matmul %116, %118, %cst_56 {dimension_numbers = #tpu.dot_dimension_numbers<[1], [0], [0], [1], [0, 0, 1, 1], [], []>} : vector<16x32xf32>, vector<32x128xf32>, vector<16x128xf32> -> vector<16x128xf32>
    %c0_57 = arith.constant 0 : index
    %c0_58 = arith.constant 0 : index
    %c0_59 = arith.constant 0 : index
    %120 = vector.load %arg15[%c0_57, %c0_58, %c0_59] : memref<1x1x128xf32, #tpu.memory_space<vmem>>, vector<1x1x128xf32>
    %121 = vector.shape_cast %120 : vector<1x1x128xf32> to vector<1x128xf32>
    %122 = vector.broadcast %121 : vector<1x128xf32> to vector<16x128xf32>
    %123 = arith.addf %119, %122 : vector<16x128xf32>
    %cst_60 = arith.constant 1.702000e+00 : f32
    %124 = vector.broadcast %cst_60 : f32 to vector<16x128xf32>
    %125 = arith.mulf %124, %123 : vector<16x128xf32>
    %126 = arith.negf %125 : vector<16x128xf32>
    %127 = math.exp %126 : vector<16x128xf32>
    %cst_61 = arith.constant 1.000000e+00 : f32
    %128 = vector.broadcast %cst_61 : f32 to vector<16x128xf32>
    %129 = arith.addf %128, %127 : vector<16x128xf32>
    %130 = arith.divf %128, %129 : vector<16x128xf32>
    %131 = arith.mulf %123, %130 : vector<16x128xf32>
    %c0_62 = arith.constant 0 : index
    %c0_63 = arith.constant 0 : index
    %c0_64 = arith.constant 0 : index
    %132 = vector.load %arg16[%c0_62, %c0_63, %c0_64] : memref<1x128x32xf32, #tpu.memory_space<vmem>>, vector<1x128x32xf32>
    %133 = vector.shape_cast %132 : vector<1x128x32xf32> to vector<128x32xf32>
    %cst_65 = arith.constant dense<0.000000e+00> : vector<16x32xf32>
    %134 = tpu.matmul %131, %133, %cst_65 {dimension_numbers = #tpu.dot_dimension_numbers<[1], [0], [0], [1], [0, 0, 1, 1], [], []>} : vector<16x128xf32>, vector<128x32xf32>, vector<16x32xf32> -> vector<16x32xf32>
    %c0_66 = arith.constant 0 : index
    %c0_67 = arith.constant 0 : index
    %c0_68 = arith.constant 0 : index
    %135 = vector.load %arg17[%c0_66, %c0_67, %c0_68] : memref<1x1x32xf32, #tpu.memory_space<vmem>>, vector<1x1x32xf32>
    %136 = vector.shape_cast %135 : vector<1x1x32xf32> to vector<1x32xf32>
    %137 = vector.broadcast %136 : vector<1x32xf32> to vector<16x32xf32>
    %138 = arith.addf %134, %137 : vector<16x32xf32>
    %139 = arith.addf %90, %138 : vector<16x32xf32>
    %140 = vector.shape_cast %139 : vector<16x32xf32> to vector<2x8x32xf32>
    %c0_69 = arith.constant 0 : index
    %c0_70 = arith.constant 0 : index
    %c0_71 = arith.constant 0 : index
    %141 = vector.load %arg22[%c0_69, %c0_70, %c0_71] : memref<2x8x32xf32, #tpu.memory_space<vmem>>, vector<2x8x32xf32>
    tpu.vector_store %arg22[%c0_69, %c0_70, %c0_71], %140 {strides = array<i32>} : memref<2x8x32xf32, #tpu.memory_space<vmem>>, vector<2x8x32xf32>,
    %c2_i32 = arith.constant 2 : i32
    %142 = arith.cmpi eq, %arg0, %c2_i32 : i32
    %143 = arith.extui %142 : i1 to i32
    %c0_i32_72 = arith.constant 0 : i32
    %144 = arith.cmpi ne, %143, %c0_i32_72 : i32
    scf.if %144 {
      %c0_73 = arith.constant 0 : index
      %145 = memref.load %arg1[%c0_73] : memref<2xi32, #tpu.memory_space<smem>>
      %c0_74 = arith.constant 0 : index
      %146 = arith.index_cast %145 : i32 to index
      %c0_75 = arith.constant 0 : index
      %147 = vector.load %arg22[%c0_74, %146, %c0_75] : memref<2x8x32xf32, #tpu.memory_space<vmem>>, vector<1x1x32xf32>
      %148 = vector.shape_cast %147 : vector<1x1x32xf32> to vector<1x32xf32>
      %c0_76 = arith.constant 0 : index
      %c0_77 = arith.constant 0 : index
      %149 = vector.load %arg23[%c0_76, %c0_77] : memref<2x32xf32, #tpu.memory_space<vmem>>, vector<1x32xf32>
      tpu.vector_store %arg23[%c0_76, %c0_77], %148 {strides = array<i32>} : memref<2x32xf32, #tpu.memory_space<vmem>>, vector<1x32xf32>,
      %c1 = arith.constant 1 : index
      %150 = memref.load %arg1[%c1] : memref<2xi32, #tpu.memory_space<smem>>
      %c1_78 = arith.constant 1 : index
      %151 = arith.index_cast %150 : i32 to index
      %c0_79 = arith.constant 0 : index
      %152 = vector.load %arg22[%c1_78, %151, %c0_79] : memref<2x8x32xf32, #tpu.memory_space<vmem>>, vector<1x1x32xf32>
      %153 = vector.shape_cast %152 : vector<1x1x32xf32> to vector<1x32xf32>
      %c1_80 = arith.constant 1 : index
      %c0_81 = arith.constant 0 : index
      %154 = vector.load %arg23[%c1_80, %c0_81] : memref<2x32xf32, #tpu.memory_space<vmem>>, vector<1x32xf32>
      tpu.vector_store %arg23[%c1_80, %c0_81], %153 {strides = array<i32>} : memref<2x32xf32, #tpu.memory_space<vmem>>, vector<1x32xf32>,
      %c0_82 = arith.constant 0 : index
      %c0_83 = arith.constant 0 : index
      %155 = vector.load %arg23[%c0_82, %c0_83] : memref<2x32xf32, #tpu.memory_space<vmem>>, vector<2x32xf32>
      %c0_84 = arith.constant 0 : index
      %c0_85 = arith.constant 0 : index
      %156 = vector.load %arg18[%c0_84, %c0_85] : memref<1x32xf32, #tpu.memory_space<vmem>>, vector<1x32xf32>
      %c0_86 = arith.constant 0 : index
      %c0_87 = arith.constant 0 : index
      %157 = vector.load %arg19[%c0_86, %c0_87] : memref<1x32xf32, #tpu.memory_space<vmem>>, vector<1x32xf32>
      %cst_88 = arith.constant dense<0.000000e+00> : vector<2xf32>
      %158 = vector.multi_reduction <add>, %155, %cst_88 [1] : vector<2x32xf32> to vector<2xf32>
      %159 = vector.shape_cast %158 : vector<2xf32> to vector<2x1xf32>
      %cst_89 = arith.constant 3.200000e+01 : f32
      %160 = vector.broadcast %cst_89 : f32 to vector<2x1xf32>
      %161 = arith.divf %159, %160 : vector<2x1xf32>
      %162 = vector.broadcast %161 : vector<2x1xf32> to vector<2x32xf32>
      %163 = arith.subf %155, %162 : vector<2x32xf32>
      %164 = arith.mulf %163, %163 : vector<2x32xf32>
      %cst_90 = arith.constant dense<0.000000e+00> : vector<2xf32>
      %165 = vector.multi_reduction <add>, %164, %cst_90 [1] : vector<2x32xf32> to vector<2xf32>
      %166 = vector.shape_cast %165 : vector<2xf32> to vector<2x1xf32>
      %cst_91 = arith.constant 3.200000e+01 : f32
      %167 = vector.broadcast %cst_91 : f32 to vector<2x1xf32>
      %168 = arith.divf %166, %167 : vector<2x1xf32>
      %169 = vector.broadcast %161 : vector<2x1xf32> to vector<2x32xf32>
      %170 = arith.subf %155, %169 : vector<2x32xf32>
      %cst_92 = arith.constant 9.99999974E-6 : f32
      %171 = vector.broadcast %cst_92 : f32 to vector<2x1xf32>
      %172 = arith.addf %168, %171 : vector<2x1xf32>
      %173 = math.rsqrt %172 : vector<2x1xf32>
      %174 = vector.broadcast %173 : vector<2x1xf32> to vector<2x32xf32>
      %175 = arith.mulf %170, %174 : vector<2x32xf32>
      %176 = vector.broadcast %156 : vector<1x32xf32> to vector<2x32xf32>
      %177 = arith.mulf %175, %176 : vector<2x32xf32>
      %178 = vector.broadcast %157 : vector<1x32xf32> to vector<2x32xf32>
      %179 = arith.addf %177, %178 : vector<2x32xf32>
      %c0_93 = arith.constant 0 : index
      %c0_94 = arith.constant 0 : index
      %180 = vector.load %arg20[%c0_93, %c0_94] : memref<32x32xf32, #tpu.memory_space<vmem>>, vector<32x32xf32>
      %cst_95 = arith.constant dense<0.000000e+00> : vector<2x32xf32>
      %181 = tpu.matmul %179, %180, %cst_95 {dimension_numbers = #tpu.dot_dimension_numbers<[1], [0], [0], [1], [0, 0, 1, 1], [], []>} : vector<2x32xf32>, vector<32x32xf32>, vector<2x32xf32> -> vector<2x32xf32>
      %c0_96 = arith.constant 0 : index
      %c0_97 = arith.constant 0 : index
      %182 = vector.load %arg21[%c0_96, %c0_97] : memref<2x32xf32, #tpu.memory_space<vmem>>, vector<2x32xf32>
      tpu.vector_store %arg21[%c0_96, %c0_97], %181 {strides = array<i32>} : memref<2x32xf32, #tpu.memory_space<vmem>>, vector<2x32xf32>,
    } else {
    }
    return
  }
  func.func @transform_0(%arg0: i32, %arg1: memref<2xi32, #tpu.memory_space<smem>>) -> (i32, i32, i32) {
    %c0_i32 = arith.constant 0 : i32
    %c0_i32_0 = arith.constant 0 : i32
    %c0_i32_1 = arith.constant 0 : i32
    %c0_i32_2 = arith.constant 0 : i32
    return %c0_i32, %c0_i32_0, %c0_i32_1 : i32, i32, i32
  }
  func.func @transform_1(%arg0: i32, %arg1: memref<2xi32, #tpu.memory_space<smem>>) -> (i32, i32, i32) {
    %c0_i32 = arith.constant 0 : i32
    %c0_i32_0 = arith.constant 0 : i32
    %c0_i32_1 = arith.constant 0 : i32
    %c0_i32_2 = arith.constant 0 : i32
    return %c0_i32, %c0_i32_0, %c0_i32_1 : i32, i32, i32
  }
  func.func @transform_2(%arg0: i32, %arg1: memref<2xi32, #tpu.memory_space<smem>>) -> (i32, i32, i32) {
    %c0_i32 = arith.constant 0 : i32
    %c0_i32_0 = arith.constant 0 : i32
    %c0_i32_1 = arith.constant 0 : i32
    return %arg0, %c0_i32, %c0_i32_0 : i32, i32, i32
  }
  func.func @transform_3(%arg0: i32, %arg1: memref<2xi32, #tpu.memory_space<smem>>) -> (i32, i32, i32, i32) {
    %c0_i32 = arith.constant 0 : i32
    %c0_i32_0 = arith.constant 0 : i32
    %c0_i32_1 = arith.constant 0 : i32
    %c0_i32_2 = arith.constant 0 : i32
    return %arg0, %c0_i32, %c0_i32_0, %c0_i32_1 : i32, i32, i32, i32
  }
  func.func @transform_4(%arg0: i32, %arg1: memref<2xi32, #tpu.memory_space<smem>>) -> (i32, i32, i32) {
    %c0_i32 = arith.constant 0 : i32
    %c0_i32_0 = arith.constant 0 : i32
    %c0_i32_1 = arith.constant 0 : i32
    return %arg0, %c0_i32, %c0_i32_0 : i32, i32, i32
  }
  func.func @transform_5(%arg0: i32, %arg1: memref<2xi32, #tpu.memory_space<smem>>) -> (i32, i32, i32) {
    %c0_i32 = arith.constant 0 : i32
    %c0_i32_0 = arith.constant 0 : i32
    %c0_i32_1 = arith.constant 0 : i32
    return %arg0, %c0_i32, %c0_i32_0 : i32, i32, i32
  }
  func.func @transform_6(%arg0: i32, %arg1: memref<2xi32, #tpu.memory_space<smem>>) -> (i32, i32, i32) {
    %c0_i32 = arith.constant 0 : i32
    %c0_i32_0 = arith.constant 0 : i32
    %c0_i32_1 = arith.constant 0 : i32
    return %arg0, %c0_i32, %c0_i32_0 : i32, i32, i32
  }
  func.func @transform_7(%arg0: i32, %arg1: memref<2xi32, #tpu.memory_space<smem>>) -> (i32, i32, i32) {
    %c0_i32 = arith.constant 0 : i32
    %c0_i32_0 = arith.constant 0 : i32
    %c0_i32_1 = arith.constant 0 : i32
    return %arg0, %c0_i32, %c0_i32_0 : i32, i32, i32
  }
  func.func @transform_8(%arg0: i32, %arg1: memref<2xi32, #tpu.memory_space<smem>>) -> (i32, i32, i32) {
    %c0_i32 = arith.constant 0 : i32
    %c0_i32_0 = arith.constant 0 : i32
    %c0_i32_1 = arith.constant 0 : i32
    return %arg0, %c0_i32, %c0_i32_0 : i32, i32, i32
  }
  func.func @transform_9(%arg0: i32, %arg1: memref<2xi32, #tpu.memory_space<smem>>) -> (i32, i32, i32) {
    %c0_i32 = arith.constant 0 : i32
    %c0_i32_0 = arith.constant 0 : i32
    %c0_i32_1 = arith.constant 0 : i32
    return %arg0, %c0_i32, %c0_i32_0 : i32, i32, i32
  }
  func.func @transform_10(%arg0: i32, %arg1: memref<2xi32, #tpu.memory_space<smem>>) -> (i32, i32, i32) {
    %c0_i32 = arith.constant 0 : i32
    %c0_i32_0 = arith.constant 0 : i32
    %c0_i32_1 = arith.constant 0 : i32
    return %arg0, %c0_i32, %c0_i32_0 : i32, i32, i32
  }
  func.func @transform_11(%arg0: i32, %arg1: memref<2xi32, #tpu.memory_space<smem>>) -> (i32, i32, i32) {
    %c0_i32 = arith.constant 0 : i32
    %c0_i32_0 = arith.constant 0 : i32
    %c0_i32_1 = arith.constant 0 : i32
    return %arg0, %c0_i32, %c0_i32_0 : i32, i32, i32
  }
  func.func @transform_12(%arg0: i32, %arg1: memref<2xi32, #tpu.memory_space<smem>>) -> (i32, i32, i32) {
    %c0_i32 = arith.constant 0 : i32
    %c0_i32_0 = arith.constant 0 : i32
    %c0_i32_1 = arith.constant 0 : i32
    return %arg0, %c0_i32, %c0_i32_0 : i32, i32, i32
  }
  func.func @transform_13(%arg0: i32, %arg1: memref<2xi32, #tpu.memory_space<smem>>) -> (i32, i32, i32) {
    %c0_i32 = arith.constant 0 : i32
    %c0_i32_0 = arith.constant 0 : i32
    %c0_i32_1 = arith.constant 0 : i32
    return %arg0, %c0_i32, %c0_i32_0 : i32, i32, i32
  }
  func.func @transform_14(%arg0: i32, %arg1: memref<2xi32, #tpu.memory_space<smem>>) -> (i32, i32, i32) {
    %c0_i32 = arith.constant 0 : i32
    %c0_i32_0 = arith.constant 0 : i32
    %c0_i32_1 = arith.constant 0 : i32
    return %arg0, %c0_i32, %c0_i32_0 : i32, i32, i32
  }
  func.func @transform_15(%arg0: i32, %arg1: memref<2xi32, #tpu.memory_space<smem>>) -> (i32, i32, i32) {
    %c0_i32 = arith.constant 0 : i32
    %c0_i32_0 = arith.constant 0 : i32
    %c0_i32_1 = arith.constant 0 : i32
    return %arg0, %c0_i32, %c0_i32_0 : i32, i32, i32
  }
  func.func @transform_16(%arg0: i32, %arg1: memref<2xi32, #tpu.memory_space<smem>>) -> (i32, i32) {
    %c0_i32 = arith.constant 0 : i32
    %c0_i32_0 = arith.constant 0 : i32
    %c0_i32_1 = arith.constant 0 : i32
    return %c0_i32, %c0_i32_0 : i32, i32
  }
  func.func @transform_17(%arg0: i32, %arg1: memref<2xi32, #tpu.memory_space<smem>>) -> (i32, i32) {
    %c0_i32 = arith.constant 0 : i32
    %c0_i32_0 = arith.constant 0 : i32
    %c0_i32_1 = arith.constant 0 : i32
    return %c0_i32, %c0_i32_0 : i32, i32
  }
  func.func @transform_18(%arg0: i32, %arg1: memref<2xi32, #tpu.memory_space<smem>>) -> (i32, i32) {
    %c0_i32 = arith.constant 0 : i32
    %c0_i32_0 = arith.constant 0 : i32
    %c0_i32_1 = arith.constant 0 : i32
    return %c0_i32, %c0_i32_0 : i32, i32
  }
  func.func @transform_19(%arg0: i32, %arg1: memref<2xi32, #tpu.memory_space<smem>>) -> (i32, i32) {
    %c0_i32 = arith.constant 0 : i32
    %c0_i32_0 = arith.constant 0 : i32
    %c0_i32_1 = arith.constant 0 : i32
    return %c0_i32, %c0_i32_0 : i32, i32
  }
}

</mosaic_0001>

<bundles_post_ra>
// kernel: text_encoder_forward.1
= control target key start
LH: loop header
LB: loop body
LE: loop exit
PB: predicated region body
PF: predicated region fallthrough
CT: control target
= control target key end

     0   :  { %s4957_s0 = inlined_call_operand.hbm [shape: s32[2], index: 0, kind: input, shape index: {}]   ;;  %s4958_s1 = inlined_call_operand.hbm [shape: f32[2,8,32], index: 1, kind: input, shape index: {}]   ;;  %s4959_s2 = inlined_call_operand.hbm [shape: f32[2,8,8], index: 2, kind: input, shape index: {}]   ;;  %s4960_s3 = inlined_call_operand.hbm [shape: f32[3,2,32], index: 3, kind: input, shape index: {}]   ;;  %s4961_s4 = inlined_call_operand.hbm [shape: f32[3,2,2,32], index: 4, kind: input, shape index: {}]   ;;  %s4962_s5 = inlined_call_operand.hbm [shape: f32[3,1,32], index: 5, kind: input, shape index: {}]   ;;  %s4963_s6 = inlined_call_operand.hbm [shape: f32[3,1,32], index: 6, kind: input, shape index: {}]   ;;  %s4964_s7 = inlined_call_operand.hbm [shape: f32[3,32,96], index: 7, kind: input, shape index: {}]   ;;  %s4965_s8 = inlined_call_operand.hbm [shape: f32[3,1,96], index: 8, kind: input, shape index: {}]   ;;  %s4966_s9 = inlined_call_operand.hbm [shape: f32[3,32,32], index: 9, kind: input, shape index: {}]   ;;  %s4967_s10 = inlined_call_operand.hbm [shape: f32[3,1,32], index: 10, kind: input, shape index: {}]   ;;  %s4968_s11 = inlined_call_operand.hbm [shape: f32[3,1,32], index: 11, kind: input, shape index: {}]   ;;  %s4969_s12 = inlined_call_operand.hbm [shape: f32[3,1,32], index: 12, kind: input, shape index: {}]   ;;  %s4970_s13 = inlined_call_operand.hbm [shape: f32[3,32,128], index: 13, kind: input, shape index: {}]   ;;  %s4971_s14 = inlined_call_operand.hbm [shape: f32[3,1,128], index: 14, kind: input, shape index: {}]   ;;  %s4972_s15 = inlined_call_operand.hbm [shape: f32[3,128,32], index: 15, kind: input, shape index: {}]   ;;  %s4973_s16 = inlined_call_operand.hbm [shape: f32[3,1,32], index: 16, kind: input, shape index: {}]   ;;  %s4974_s17 = inlined_call_operand.hbm [shape: f32[1,32], index: 17, kind: input, shape index: {}]   ;;  %s4975_s18 = inlined_call_operand.hbm [shape: f32[1,32], index: 18, kind: input, shape index: {}]   ;;  %s4976_s19 = inlined_call_operand.hbm [shape: f32[32,32], index: 19, kind: input, shape index: {}]   ;;  %s4977_s20 = inlined_call_operand.hbm [shape: f32[2,32], index: 20, kind: output, shape index: {}]  }
   0x1   :  { %5008 = sst [smem:[#allocation43_spill]] %s4957_s0 }
   0x2   :  { %5009 = sst [smem:[#allocation44_spill]] %s4958_s1  ;;  %s5024_s23 = sld [smem:[#allocation43_spill]] }
   0x3   :  { %5010 = sst [smem:[#allocation45_spill]] %s4959_s2 }
   0x4   :  { %5011 = sst [smem:[#allocation46_spill]] %s4960_s3 }
   0x5   :  { %5012 = sst [smem:[#allocation47_spill]] %s4961_s4 }
   0x6   :  { %5013 = sst [smem:[#allocation48_spill]] %s4962_s5 }
   0x7   :  { %5014 = sst [smem:[#allocation49_spill]] %s4963_s6 }
   0x8   :  { %5015 = sst [smem:[#allocation50_spill]] %s4964_s7 }
   0x9   :  { %5016 = sst [smem:[#allocation51_spill]] %s4965_s8 }
   0xa   :  { %5017 = sst [smem:[#allocation52_spill]] %s4966_s9 }
   0xb   :  { %5018 = sst [smem:[#allocation53_spill]] %s4970_s13 }
   0xc   :  { %5019 = sst [smem:[#allocation54_spill]] %s4971_s14  ;;  %s3336_s14 = scalar_lea.hbm %s5024_s23, 16 }
   0xd   :  { %5020 = sst [smem:[#allocation55_spill]] %s4972_s15  ;;  %p3337_p0 = scmp.ne.s32.totalorder %s5024_s23, %s3336_s14 }
   0xe   :  { %5021 = sst [smem:[#allocation56_spill]] %s4973_s16  ;;  %p3340_p1 = scmp.lt.u32.totalorder %s3336_s14, %s5024_s23 }
   0xf   :  { %5022 = sst [smem:[#allocation57_spill]] %s4975_s18 }
  0x10   :  { %5023 = sst [smem:[#allocation58_spill]] %s4977_s20  ;;  %p3342_p2 = pnand %p3340_p1, %p3337_p0 }
  0x12   :  { %3345 = shalt.err (!%p3342_p2)  }
  0x13   :  { %s3962_s26 = smov [#allocation5]  }
  0x14   :  { %26 = dma.hbm_to_smem %s5024_s23, 16, %s3962_s26, [#allocation4] }
  0x15   :  { %3920 = dma.done.wait [#allocation4], 16 }
  0x16   :  { %3921 = vsyncadd [#allocation4], 4294967280 }
  0x17   :  { %28 = sfence }
  0x18   :  { %29 = vsyncpa [#allocation7], 0 }
  0x19   :  { %30 = vsyncpa [#allocation10], 0 }
  0x1a   :  { %31 = vsyncpa [#allocation27], 0 }
  0x1b   :  { %32 = vsyncpa [#allocation8], 0  ;;  %s4116_s4 = smov 0   ;;  %s4118_s29 = smov 0  }
  0x1c   :  { %s4120_s30 = smov 0   ;;  %s4122_s14 = smov 0  }
  0x1d LB: > { %5025 = sst [smem:[#allocation37_spill]] %s3952_s29  ;;  %s4135_s0 = sadd.s32 4294967295, %s3960_s14   ;;  %s3960_s14 = sphi %s4122_s14, %s5076_s14   ;;  %s3956_s30 = sphi %s4120_s30, %s5080_s30   ;;  %s3952_s29 = sphi %s4118_s29, %s5079_s29   ;;  %s3948_s4 = sphi %s4116_s4, %s5077_s4  }
  0x1e   : > { %5026 = sst [smem:[#allocation38_spill]] %s4135_s0  ;;  %s4138_s21 = sadd.s32 1, %s3960_s14  }
  0x1f   : > { %5027 = sst [smem:[#allocation39_spill]] %s4138_s21  ;;  %s84_s1 = ssub.s32 %s3960_s14, %s4138_s21 }
  0x20   : > { %s87_s22 = sadd.s32 1, %s3956_s30  ;;  %p85_p3 = scmp.eq.s32.totalorder %s84_s1, 0 }
  0x21   : > { %p94_p4 = scmp.ne.s32.totalorder %s3956_s30, %s3952_s29  ;;  %p95_p5 = scmp.eq.s32.totalorder %s3960_s14, 0 }
  0x22   : > { %p100_p6 = scmp.ne.s32.totalorder %s3952_s29, %s3948_s4  ;;  %p4993_p8 = scmp.eq.s32.totalorder %s4135_s0, 0 }
  0x23   : > { %s4148_s23 = scalar_select %p85_p3, %s3956_s30, %s87_s22  }
  0x24   : > { %p4150_p7 = por %p95_p5, %p94_p4  ;;  %p2831_p9 = scmp.ge.s32.totalorder %s3960_s14, 1 }
  0x25   : > { %5028 = sst [smem:[#allocation40_spill]] %s4148_s23  ;;  %p533_p10 = scmp.lt.s32.totalorder %s3960_s14, 4 }
  0x26   : > { %s5029_s24 = scalar_select %p4150_p7, 1, 0 }
  0x27   : > { %p4159_p11 = por %p4993_p8, %p100_p6  ;;  %p4164_p13 = pnand %p2831_p9, %p533_p10 }
  0x28   : > { %s3963_s3 = smov [#allocation9]   ;;  %s3964_s28 = smov [#allocation26]  }
  0x29   : > { %s5030_s2 = scalar_select %p4159_p11, 1, 0 }
  0x2a   : > { %s5032_s25 = scalar_select %p4164_p13, 1, 0 }
  0x2b   : > { %5031 = sst [smem:[#allocation41_spill]] %s5030_s2  ;;  %p3219_p0 = pneg %p4164_p13 }
  0x2c   : > { %5033 = sst [smem:[#allocation42_spill]] %s5032_s25  ;;  %s558_s26 = sshll.u32 %s3963_s3, 4  ;;  %s4170_s26 = int_to_ptr.vmem [resolvable:$true] %s558_s26 }
  0x2d   : > { %p4174_p1 = pnand %p3219_p0, %p4993_p8  ;;  %s583_s4 = sshll.u32 %s3964_s28, 4  ;;  %s4178_s4 = int_to_ptr.vmem [resolvable:$true] %s583_s4 }
  0x2e   : > { %s3965_s1 = smov [#allocation6]   ;;  %s5035_s20 = sld [smem:[#allocation45_spill]] }
  0x2f   : > { %s4180_s22 = sshll.u32 %s3965_s1, 4  ;;  %p4190_p3 = pneg %p4174_p1  ;;  %s546_s22 = int_to_ptr.vmem [resolvable:$true] %s4180_s22 }
  0x34   : > { %s3346_s2 = scalar_lea.hbm %s5035_s20, 256 }
  0x35   : > { %p3347_p2 = scmp.ne.s32.totalorder %s5035_s20, %s3346_s2  ;;  %p3353_p6 = scmp.lt.u32.totalorder %s3346_s2, %s5035_s20 }
  0x37   : > { %p3349_p4 = pnand %p4190_p3, %p3347_p2 }
  0x39   : > { %p3350_p5 = pneg %p3349_p4 }
  0x3b   : > { %p3355_p9 = pnand %p3353_p6, %p3350_p5 }
  0x3d   : > { %3358 = shalt.err (!%p3355_p9)
}
  0x3e   : > { %s3359_s29 = scalar_lea.vmem %s4170_s26, 256  ;;  %p3367_p8 = scmp.lt.s32.totalorder %s4170_s26, %s4170_s26 }
  0x3f   : > { %p3360_p10 = scmp.ne.s32.totalorder %s4170_s26, %s3359_s29  ;;  %p3368_p11 = scmp.lt.s32.totalorder %s3359_s29, %s3359_s29 }
  0x41   : > { %p3362_p0 = pnand %p3360_p10, %p4190_p3  ;;  %p3369_p2 = por %p3368_p11, %p3367_p8 }
  0x43   : > { %p3363_p12 = pneg %p3362_p0 }
  0x45   : > { %p3370_p4 = pnand %p3369_p2, %p3363_p12 }
  0x47   : > { %3373 = shalt.err (!%p3370_p4)
}
  0x48   : > { %s3966_s21 = smov 128   ;;  %s3967_s23 = smov 8  }
  0x49   : > { %3225 = dma.hbm_to_vmem [thread:$0]  (!%p4174_p1), %s5035_s20, 256, %s4170_s26, [#allocation10], %s3966_s21, %s3966_s21, %s3967_s23  }
  0x4a   : > { %s5037_s18 = sld [smem:[#allocation57_spill]] }
  0x50   : > { %s3374_s29 = scalar_lea.hbm %s5037_s18, 16 }
  0x51   : > { %p3375_p8 = scmp.ne.s32.totalorder %s5037_s18, %s3374_s29  ;;  %p3381_p5 = scmp.lt.u32.totalorder %s3374_s29, %s5037_s18 }
  0x53   : > { %p3377_p11 = pnand %p3375_p8, %p4190_p3 }
  0x55   : > { %p3378_p12 = pneg %p3377_p11 }
  0x57   : > { %p3383_p6 = pnand %p3381_p5, %p3378_p12 }
  0x59   : > { %3386 = shalt.err (!%p3383_p6)
}
  0x5a   : > { %s3387_s26 = scalar_lea.vmem %s4178_s4, 16  ;;  %s3394_s16 = scalar_lea.vmem %s4178_s4, 32 }
  0x5b   : > { %p3388_p9 = scmp.ne.s32.totalorder %s4178_s4, %s3387_s26  ;;  %p3395_p2 = scmp.lt.s32.totalorder %s4178_s4, %s4178_s4 }
  0x5c   : > { %p3396_p4 = scmp.lt.s32.totalorder %s3394_s16, %s3387_s26 }
  0x5d   : > { %p3390_p10 = pnand %p3388_p9, %p4190_p3 }
  0x5e   : > { %p3397_p8 = por %p3396_p4, %p3395_p2 }
  0x5f   : > { %p3391_p0 = pneg %p3390_p10 }
  0x61   : > { %p3398_p11 = pnand %p3397_p8, %p3391_p0 }
  0x63   : > { %3401 = shalt.err (!%p3398_p11)
}
  0x64   : > { %3231 = dma.hbm_to_vmem [thread:$0]  (!%p4174_p1), %s5037_s18, 16, %s4178_s4, [#allocation27]  }
  0x65   : > { %s5038_s3 = sld [smem:[#allocation44_spill]] }
  0x6b   : > { %s3402_s28 = scalar_lea.hbm %s5038_s3, 256 }
  0x6c   : > { %p3403_p12 = scmp.ne.s32.totalorder %s5038_s3, %s3402_s28  ;;  %p3409_p9 = scmp.lt.u32.totalorder %s3402_s28, %s5038_s3 }
  0x6e   : > { %p3405_p5 = pnand %p3403_p12, %p4190_p3 }
  0x70   : > { %p3406_p6 = pneg %p3405_p5 }
  0x72   : > { %p3411_p10 = pnand %p3409_p9, %p3406_p6 }
  0x74   : > { %3414 = shalt.err (!%p3411_p10)
}
  0x75   : > { %s3415_s13 = scalar_lea.vmem %s546_s22, 256  ;;  %p3423_p8 = scmp.lt.s32.totalorder %s546_s22, %s546_s22 }
  0x76   : > { %p3416_p0 = scmp.ne.s32.totalorder %s546_s22, %s3415_s13  ;;  %p3424_p11 = scmp.lt.s32.totalorder %s3415_s13, %s3415_s13 }
  0x78   : > { %p3418_p2 = pnand %p3416_p0, %p4190_p3  ;;  %p3425_p13 = por %p3424_p11, %p3423_p8 }
  0x7a   : > { %p3419_p4 = pneg %p3418_p2 }
  0x7c   : > { %p3426_p7 = pnand %p3425_p13, %p3419_p4 }
  0x7e   : > { %3429 = shalt.err (!%p3426_p7)
}
  0x7f   : > { %3222 = dma.hbm_to_vmem [thread:$0]  (!%p4174_p1), %s5038_s3, 256, %s546_s22, [#allocation7], %s3966_s21, %s3966_s21, %s3967_s23  }
  0x80   : > { %s3968_s25 = smov [#allocation25]   ;;  %s3969_s28 = smov [#allocation28]  }
  0x81   : > { %s572_s2 = sshll.u32 %s3968_s25, 4  ;;  %s593_s1 = sshll.u32 %s3969_s28, 4  ;;  %s573_s2 = int_to_ptr.vmem [resolvable:$true] %s572_s2  ;;  %s594_s1 = int_to_ptr.vmem [resolvable:$true] %s593_s1 }
  0x82   : > { %s3430_s16 = scalar_lea.hbm %s4974_s17, 16 }
  0x83   : > { %p3431_p7 = scmp.ne.s32.totalorder %s4974_s17, %s3430_s16  ;;  %p3437_p5 = scmp.lt.u32.totalorder %s3430_s16, %s4974_s17 }
  0x85   : > { %p3433_p13 = pnand %p3431_p7, %p4190_p3 }
  0x87   : > { %p3434_p12 = pneg %p3433_p13 }
  0x89   : > { %p3439_p6 = pnand %p3437_p5, %p3434_p12 }
  0x8b   : > { %3442 = shalt.err (!%p3439_p6)
}
  0x8c   : > { %s3443_s22 = scalar_lea.vmem %s573_s2, 16  ;;  %s3450_s15 = scalar_lea.vmem %s573_s2, 32 }
  0x8d   : > { %p3444_p9 = scmp.ne.s32.totalorder %s573_s2, %s3443_s22  ;;  %p3451_p2 = scmp.lt.s32.totalorder %s573_s2, %s573_s2 }
  0x8e   : > { %p3452_p4 = scmp.lt.s32.totalorder %s3450_s15, %s3443_s22 }
  0x8f   : > { %p3446_p10 = pnand %p3444_p9, %p4190_p3 }
  0x90   : > { %p3453_p8 = por %p3452_p4, %p3451_p2 }
  0x91   : > { %p3447_p0 = pneg %p3446_p10 }
  0x93   : > { %p3454_p11 = pnand %p3453_p8, %p3447_p0 }
  0x95   : > { %3457 = shalt.err (!%p3454_p11)
}
  0x96   : > { %3228 = dma.hbm_to_vmem [thread:$0]  (!%p4174_p1), %s4974_s17, 16, %s573_s2, [#allocation10]  }
  0x97   : > { %s3458_s29 = scalar_lea.hbm %s4976_s19, 512 }
  0x98   : > { %p3459_p7 = scmp.ne.s32.totalorder %s4976_s19, %s3458_s29  ;;  %p3465_p5 = scmp.lt.u32.totalorder %s3458_s29, %s4976_s19 }
  0x9a   : > { %p3461_p13 = pnand %p3459_p7, %p4190_p3 }
  0x9c   : > { %p3462_p12 = pneg %p3461_p13 }
  0x9e   : > { %p3467_p6 = pnand %p3465_p5, %p3462_p12 }
  0xa0   : > { %3470 = shalt.err (!%p3467_p6)
}
  0xa1   : > { %s3471_s22 = scalar_lea.vmem %s594_s1, 512  ;;  %p3479_p2 = scmp.lt.s32.totalorder %s594_s1, %s594_s1 }
  0xa2   : > { %p3472_p9 = scmp.ne.s32.totalorder %s594_s1, %s3471_s22  ;;  %p3480_p4 = scmp.lt.s32.totalorder %s3471_s22, %s3471_s22 }
  0xa4   : > { %p3474_p10 = pnand %p3472_p9, %p4190_p3  ;;  %p3481_p8 = por %p3480_p4, %p3479_p2 }
  0xa6   : > { %p3475_p0 = pneg %p3474_p10 }
  0xa8   : > { %p3482_p11 = pnand %p3481_p8, %p3475_p0 }
  0xaa   : > { %3485 = shalt.err (!%p3482_p11)
}
  0xab   : > { %3234 = dma.hbm_to_vmem [thread:$0]  (!%p4174_p1), %s4976_s19, 512, %s594_s1, [#allocation27], %s3966_s21, %s3966_s21, %s3967_s23  }
  0xac   : > { %p2837_p7 = scmp.ge.s32.totalorder %s3960_s14, 3 }
  0xad   : > { %s607_s0 = sand.u32 (!%p2837_p7), 1, %s3960_s14   ;;  %s4302_s18 = sand.u32 (!%p2837_p7), 1, %s3956_s30  }
  0xae   : > { %603 = sbr.rel (%p2837_p7) target bundleno = 547 (0x223), region = 36  ;;  %s2838_s27 = sshll.u32 (!%p2837_p7), %s4302_s18, 1 }
  0xaf   : > { %s2839_s25 = sshll.u32 (!%p2837_p7), %s3960_s14, 5  ;;  %s5039_s29 = sld [smem:[#allocation46_spill]] (!%p2837_p7) }
  0xb0   : > { %s611_s21 = scalar_lea.vmem (!%p2837_p7), [#allocation11], %s2838_s27  ;;  %s2840_s1 = sshll.u32 (!%p2837_p7), %s4302_s18, 2 }
  0xb1   : > { %s618_s23 = sshll.u32 (!%p2837_p7), %s611_s21, 4  ;;  %s4314_s13 = scalar_lea.sflag (!%p2837_p7), [#allocation7], %s607_s0  ;;  %s4311_s23 = int_to_ptr.vmem [resolvable:$true] %s618_s23 }
  0xb2   : > { %p5041_p3 = scmp.ne.s32.totalorder (!%p2837_p7), %s5029_s24, 0 }
  0xb5   : > { %s5040_s26 = smov %s5039_s29  ;;  %s4309_s16 = scalar_lea.hbm %s5039_s29, %s2839_s25 }
  0xb6   : > { %s3486_s4 = scalar_lea.hbm %s4309_s16, 32  ;;  %s3490_s15 = scalar_lea.hbm %s5040_s26, 96 }
  0xb7   : > { %p3487_p1 = scmp.ne.s32.totalorder %s4309_s16, %s3486_s4  ;;  %p3491_p5 = scmp.lt.u32.totalorder %s4309_s16, %s5040_s26 }
  0xb8   : > { %p3492_p6 = scmp.lt.u32.totalorder %s3490_s15, %s3486_s4  ;;  %p3494_p10 = scmp.lt.u32.totalorder %s3486_s4, %s4309_s16 }
  0xb9   : > { %p3488_p13 = pnand %p3487_p1, %p5041_p3 }
  0xba   : > { %p3493_p9 = por %p3492_p6, %p3491_p5 }
  0xbb   : > { %p3489_p12 = pneg %p3488_p13 }
  0xbc   : > { %p3495_p0 = por %p3494_p10, %p3493_p9 }
  0xbe   : > { %p3496_p2 = pnand %p3495_p0, %p3489_p12 }
  0xc0   : > { %3499 = shalt.err (!%p3496_p2)
}
  0xc1   : > { %s3500_s0 = scalar_lea.vmem %s4311_s23, 32  ;;  %s3970_s27 = smov [#allocation11]  }
  0xc2   : > { %p3501_p4 = scmp.ne.s32.totalorder %s4311_s23, %s3500_s0  ;;  %s3504_s28 = sshll.u32 %s3970_s27, 4  ;;  %s3505_s28 = int_to_ptr.vmem [resolvable:$false] %s3504_s28 }
  0xc3   : > { %s3506_s29 = scalar_lea.vmem %s3505_s28, 64  ;;  %p3507_p7 = scmp.lt.s32.totalorder %s4311_s23, %s3505_s28 }
  0xc4   : > { %p3502_p8 = pnand %p3501_p4, %p5041_p3  ;;  %p3508_p1 = scmp.lt.s32.totalorder %s3506_s29, %s3500_s0 }
  0xc6   : > { %p3503_p11 = pneg %p3502_p8  ;;  %p3509_p13 = por %p3508_p1, %p3507_p7 }
  0xc8   : > { %p3510_p5 = pnand %p3509_p13, %p3503_p11 }
  0xca   : > { %3513 = shalt.err (!%p3510_p5)
}
  0xcb   : > { %3177 = dma.hbm_to_vmem [thread:$0]  (%p5041_p3), %s4309_s16, 32, %s4311_s23, %s4314_s13  }
  0xcc   : > { %s2917_s21 = sshll.u32 %s3960_s14, 6  ;;  %s5042_s2 = sld [smem:[#allocation47_spill]] }
  0xcd   : > { %s629_s25 = scalar_lea.vmem [#allocation12], %s2840_s1 }
  0xce   : > { %s636_s20 = sshll.u32 %s629_s25, 4  ;;  %s4346_s20 = int_to_ptr.vmem [resolvable:$true] %s636_s20 }
  0xd2   : > { %s4342_s15 = scalar_lea.hbm %s5042_s2, %s2917_s21  ;;  %s3518_s27 = scalar_lea.hbm %s5042_s2, 192 }
  0xd3   : > { %s3514_s0 = scalar_lea.hbm %s4342_s15, 64  ;;  %p3519_p10 = scmp.lt.u32.totalorder %s4342_s15, %s5042_s2 }
  0xd4   : > { %p3515_p12 = scmp.ne.s32.totalorder %s4342_s15, %s3514_s0  ;;  %p3520_p0 = scmp.lt.u32.totalorder %s3518_s27, %s3514_s0 }
  0xd5   : > { %p3522_p4 = scmp.lt.u32.totalorder %s3514_s0, %s4342_s15 }
  0xd6   : > { %p3516_p6 = pnand %p3515_p12, %p5041_p3  ;;  %p3521_p2 = por %p3520_p0, %p3519_p10 }
  0xd8   : > { %p3517_p9 = pneg %p3516_p6  ;;  %p3523_p8 = por %p3522_p4, %p3521_p2 }
  0xda   : > { %p3524_p11 = pnand %p3523_p8, %p3517_p9 }
  0xdc   : > { %3527 = shalt.err (!%p3524_p11)
}
  0xdd   : > { %s3528_s1 = scalar_lea.vmem %s4346_s20, 64  ;;  %s3971_s21 = smov [#allocation12]  }
  0xde   : > { %p3529_p7 = scmp.ne.s32.totalorder %s4346_s20, %s3528_s1  ;;  %s3532_s4 = sshll.u32 %s3971_s21, 4  ;;  %s3533_s4 = int_to_ptr.vmem [resolvable:$false] %s3532_s4 }
  0xdf   : > { %s3534_s22 = scalar_lea.vmem %s3533_s4, 128  ;;  %p3535_p5 = scmp.lt.s32.totalorder %s4346_s20, %s3533_s4 }
  0xe0   : > { %p3530_p1 = pnand %p3529_p7, %p5041_p3  ;;  %p3536_p12 = scmp.lt.s32.totalorder %s3534_s22, %s3528_s1 }
  0xe2   : > { %p3531_p13 = pneg %p3530_p1  ;;  %p3537_p6 = por %p3536_p12, %p3535_p5 }
  0xe4   : > { %p3538_p10 = pnand %p3537_p6, %p3531_p13 }
  0xe6   : > { %3541 = shalt.err (!%p3538_p10)
}
  0xe7   : > { %s3972_s25 = smov 32   ;;  %s3973_s0 = smov 2  }
  0xe8   : > { %3178 = dma.hbm_to_vmem [thread:$0]  (%p5041_p3), %s4342_s15, 64, %s4346_s20, %s4314_s13, %s3972_s25, %s3972_s25, %s3973_s0  }
  0xe9   : > { %s4371_s16 = sshll.u32 %s3960_s14, 4  ;;  %s649_s23 = scalar_lea.vmem [#allocation13], %s4302_s18 }
  0xea   : > { %s656_s27 = sshll.u32 %s649_s23, 4  ;;  %s5043_s5 = sld [smem:[#allocation48_spill]]  ;;  %s657_s27 = int_to_ptr.vmem [resolvable:$true] %s656_s27 }
  0xf0   : > { %s654_s1 = scalar_lea.hbm %s5043_s5, %s4371_s16  ;;  %s3546_s2 = scalar_lea.hbm %s5043_s5, 48 }
  0xf1   : > { %s3542_s21 = scalar_lea.hbm %s654_s1, 16  ;;  %p3547_p4 = scmp.lt.u32.totalorder %s654_s1, %s5043_s5 }
  0xf2   : > { %p3543_p9 = scmp.ne.s32.totalorder %s654_s1, %s3542_s21  ;;  %p3548_p8 = scmp.lt.u32.totalorder %s3546_s2, %s3542_s21 }
  0xf3   : > { %p3550_p7 = scmp.lt.u32.totalorder %s3542_s21, %s654_s1 }
  0xf4   : > { %p3544_p0 = pnand %p3543_p9, %p5041_p3  ;;  %p3549_p11 = por %p3548_p8, %p3547_p4 }
  0xf6   : > { %p3545_p2 = pneg %p3544_p0  ;;  %p3551_p1 = por %p3550_p7, %p3549_p11 }
  0xf8   : > { %p3552_p13 = pnand %p3551_p1, %p3545_p2 }
  0xfa   : > { %3555 = shalt.err (!%p3552_p13)
}
  0xfb   : > { %s3556_s25 = scalar_lea.vmem %s657_s27, 16  ;;  %s3974_s0 = smov [#allocation13]  }
  0xfc   : > { %p3557_p5 = scmp.ne.s32.totalorder %s657_s27, %s3556_s25  ;;  %s3560_s23 = sshll.u32 %s3974_s0, 4  ;;  %s3561_s23 = int_to_ptr.vmem [resolvable:$false] %s3560_s23 }
  0xfd   : > { %s3562_s28 = scalar_lea.vmem %s3561_s23, 32  ;;  %p3563_p10 = scmp.lt.s32.totalorder %s657_s27, %s3561_s23 }
  0xfe   : > { %p3558_p12 = pnand %p3557_p5, %p5041_p3  ;;  %p3564_p9 = scmp.lt.s32.totalorder %s3562_s28, %s3556_s25 }
 0x100   : > { %p3559_p6 = pneg %p3558_p12  ;;  %p3565_p0 = por %p3564_p9, %p3563_p10 }
 0x102   : > { %p3566_p4 = pnand %p3565_p0, %p3559_p6 }
 0x104   : > { %3569 = shalt.err (!%p3566_p4)
}
 0x105   : > { %3179 = dma.hbm_to_vmem [thread:$0]  (%p5041_p3), %s654_s1, 16, %s657_s27, %s4314_s13  }
 0x106   : > { %s5044_s6 = sld [smem:[#allocation49_spill]]  ;;  %s666_s4 = scalar_lea.vmem [#allocation14], %s4302_s18 }
 0x107   : > { %s673_s22 = sshll.u32 %s666_s4, 4  ;;  %s4399_s15 = sshll.u32 %s4302_s18, 5  ;;  %s674_s22 = int_to_ptr.vmem [resolvable:$true] %s673_s22 }
 0x10c   : > { %s4395_s21 = scalar_lea.hbm %s5044_s6, %s4371_s16  ;;  %s3574_s25 = scalar_lea.hbm %s5044_s6, 48 }
 0x10d   : > { %s3570_s20 = scalar_lea.hbm %s4395_s21, 16  ;;  %p3575_p7 = scmp.lt.u32.totalorder %s4395_s21, %s5044_s6 }
 0x10e   : > { %p3571_p2 = scmp.ne.s32.totalorder %s4395_s21, %s3570_s20  ;;  %p3576_p1 = scmp.lt.u32.totalorder %s3574_s25, %s3570_s20 }
 0x10f   : > { %p3578_p5 = scmp.lt.u32.totalorder %s3570_s20, %s4395_s21 }
 0x110   : > { %p3572_p8 = pnand %p3571_p2, %p5041_p3  ;;  %p3577_p13 = por %p3576_p1, %p3575_p7 }
 0x112   : > { %p3573_p11 = pneg %p3572_p8  ;;  %p3579_p12 = por %p3578_p5, %p3577_p13 }
 0x114   : > { %p3580_p6 = pnand %p3579_p12, %p3573_p11 }
 0x116   : > { %3583 = shalt.err (!%p3580_p6)
}
 0x117   : > { %s3584_s28 = scalar_lea.vmem %s674_s22, 16  ;;  %s3975_s2 = smov [#allocation14]  }
 0x118   : > { %p3585_p10 = scmp.ne.s32.totalorder %s674_s22, %s3584_s28  ;;  %s3588_s29 = sshll.u32 %s3975_s2, 4  ;;  %s3589_s29 = int_to_ptr.vmem [resolvable:$false] %s3588_s29 }
 0x119   : > { %s3590_s4 = scalar_lea.vmem %s3589_s29, 32  ;;  %p3591_p4 = scmp.lt.s32.totalorder %s674_s22, %s3589_s29 }
 0x11a   : > { %p3586_p9 = pnand %p3585_p10, %p5041_p3  ;;  %p3592_p2 = scmp.lt.s32.totalorder %s3590_s4, %s3584_s28 }
 0x11c   : > { %p3587_p0 = pneg %p3586_p9  ;;  %p3593_p8 = por %p3592_p2, %p3591_p4 }
 0x11e   : > { %p3594_p1 = pnand %p3593_p8, %p3587_p0 }
 0x120   : > { %3597 = shalt.err (!%p3594_p1)
}
 0x121   : > { %3180 = dma.hbm_to_vmem [thread:$0]  (%p5041_p3), %s4395_s21, 16, %s674_s22, %s4314_s13  }
 0x122   : > { %s4420_s20 = sshll.u32 %s3960_s14, 9  ;;  %s684_s27 = scalar_lea.vmem [#allocation15], %s4399_s15 }
 0x123   : > { %s691_s1 = sshll.u32 %s684_s27, 4  ;;  %s5045_s7 = sld [smem:[#allocation50_spill]]  ;;  %s4429_s1 = int_to_ptr.vmem [resolvable:$true] %s691_s1 }
 0x129   : > { %s4427_s23 = scalar_lea.hbm %s5045_s7, %s4420_s20  ;;  %s3602_s2 = scalar_lea.hbm %s5045_s7, 1536 }
 0x12a   : > { %s3598_s28 = scalar_lea.hbm %s4427_s23, 512  ;;  %p3603_p5 = scmp.lt.u32.totalorder %s4427_s23, %s5045_s7 }
 0x12b   : > { %p3599_p11 = scmp.ne.s32.totalorder %s4427_s23, %s3598_s28  ;;  %p3604_p12 = scmp.lt.u32.totalorder %s3602_s2, %s3598_s28 }
 0x12c   : > { %p3606_p10 = scmp.lt.u32.totalorder %s3598_s28, %s4427_s23 }
 0x12d   : > { %p3600_p7 = pnand %p3599_p11, %p5041_p3  ;;  %p3605_p6 = por %p3604_p12, %p3603_p5 }
 0x12f   : > { %p3601_p13 = pneg %p3600_p7  ;;  %p3607_p9 = por %p3606_p10, %p3605_p6 }
 0x131   : > { %p3608_p0 = pnand %p3607_p9, %p3601_p13 }
 0x133   : > { %3611 = shalt.err (!%p3608_p0)
}
 0x134   : > { %s3612_s27 = scalar_lea.vmem %s4429_s1, 512  ;;  %s3976_s25 = smov [#allocation15]  }
 0x135   : > { %p3613_p4 = scmp.ne.s32.totalorder %s4429_s1, %s3612_s27  ;;  %s3616_s0 = sshll.u32 %s3976_s25, 4  ;;  %s3617_s0 = int_to_ptr.vmem [resolvable:$false] %s3616_s0 }
 0x136   : > { %s3618_s21 = scalar_lea.vmem %s3617_s0, 1024  ;;  %p3619_p1 = scmp.lt.s32.totalorder %s4429_s1, %s3617_s0 }
 0x137   : > { %p3614_p2 = pnand %p3613_p4, %p5041_p3  ;;  %p3620_p11 = scmp.lt.s32.totalorder %s3618_s21, %s3612_s27 }
 0x139   : > { %p3615_p8 = pneg %p3614_p2  ;;  %p3621_p7 = por %p3620_p11, %p3619_p1 }
 0x13b   : > { %p3622_p5 = pnand %p3621_p7, %p3615_p8 }
 0x13d   : > { %3625 = shalt.err (!%p3622_p5)
}
 0x13e   : > { %s5004_s28 = smov 128   ;;  %s5006_s22 = smov 8  }
 0x13f   : > { %3181 = dma.hbm_to_vmem [thread:$0]  (%p5041_p3), %s4427_s23, 512, %s4429_s1, %s4314_s13, %s5004_s28, %s5004_s28, %s5006_s22  }
 0x140   : > { %s5046_s8 = sld [smem:[#allocation51_spill]]  ;;  %s704_s27 = scalar_lea.vmem [#allocation16], %s4302_s18 }
 0x141   : > { %s711_s25 = sshll.u32 %s704_s27, 4  ;;  %s5047_s9 = sld [smem:[#allocation52_spill]]  ;;  %s712_s25 = int_to_ptr.vmem [resolvable:$true] %s711_s25 }
 0x146   : > { %s4460_s4 = scalar_lea.hbm %s5046_s8, %s4371_s16  ;;  %s3630_s2 = scalar_lea.hbm %s5046_s8, 48 }
 0x147   : > { %s4467_s3 = scalar_lea.hbm %s5047_s9, %s4420_s20  ;;  %s3626_s5 = scalar_lea.hbm %s4460_s4, 16 }
 0x148   : > { %p3627_p13 = scmp.ne.s32.totalorder %s4460_s4, %s3626_s5  ;;  %p3631_p10 = scmp.lt.u32.totalorder %s4460_s4, %s5046_s8 }
 0x149   : > { %p3632_p9 = scmp.lt.u32.totalorder %s3630_s2, %s3626_s5  ;;  %p3634_p4 = scmp.lt.u32.totalorder %s3626_s5, %s4460_s4 }
 0x14a   : > { %p3628_p12 = pnand %p3627_p13, %p5041_p3 }
 0x14b   : > { %p3633_p0 = por %p3632_p9, %p3631_p10 }
 0x14c   : > { %p3629_p6 = pneg %p3628_p12 }
 0x14d   : > { %p3635_p2 = por %p3634_p4, %p3633_p0 }
 0x14f   : > { %p3636_p8 = pnand %p3635_p2, %p3629_p6 }
 0x151   : > { %3639 = shalt.err (!%p3636_p8)
}
 0x152   : > { %s3640_s27 = scalar_lea.vmem %s712_s25, 16  ;;  %s3979_s0 = smov [#allocation16]  }
 0x153   : > { %p3641_p1 = scmp.ne.s32.totalorder %s712_s25, %s3640_s27  ;;  %s3644_s21 = sshll.u32 %s3979_s0, 4  ;;  %s3645_s21 = int_to_ptr.vmem [resolvable:$false] %s3644_s21 }
 0x154   : > { %s3646_s1 = scalar_lea.vmem %s3645_s21, 32  ;;  %p3647_p5 = scmp.lt.s32.totalorder %s712_s25, %s3645_s21 }
 0x155   : > { %p3642_p11 = pnand %p3641_p1, %p5041_p3  ;;  %p3648_p13 = scmp.lt.s32.totalorder %s3646_s1, %s3640_s27 }
 0x157   : > { %p3643_p7 = pneg %p3642_p11  ;;  %p3649_p12 = por %p3648_p13, %p3647_p5 }
 0x159   : > { %p3650_p9 = pnand %p3649_p12, %p3643_p7 }
 0x15b   : > { %3653 = shalt.err (!%p3650_p9)
}
 0x15c   : > { %3182 = dma.hbm_to_vmem [thread:$0]  (%p5041_p3), %s4460_s4, 16, %s712_s25, %s4314_s13  }
 0x15d   : > { %s722_s5 = scalar_lea.vmem [#allocation17], %s4399_s15  ;;  %s4494_s29 = scalar_lea.hbm %s4967_s10, %s4371_s16 }
 0x15e   : > { %s729_s28 = sshll.u32 %s722_s5, 4  ;;  %s3654_s27 = scalar_lea.hbm %s4467_s3, 512  ;;  %s4488_s28 = int_to_ptr.vmem [resolvable:$true] %s729_s28 }
 0x15f   : > { %p3655_p6 = scmp.ne.s32.totalorder %s4467_s3, %s3654_s27  ;;  %s3658_s1 = scalar_lea.hbm %s5047_s9, 1536 }
 0x160   : > { %p3659_p4 = scmp.lt.u32.totalorder %s4467_s3, %s5047_s9  ;;  %p3660_p2 = scmp.lt.u32.totalorder %s3658_s1, %s3654_s27 }
 0x161   : > { %p3656_p10 = pnand %p3655_p6, %p5041_p3  ;;  %p3662_p1 = scmp.lt.u32.totalorder %s3654_s27, %s4467_s3 }
 0x162   : > { %p3661_p8 = por %p3660_p2, %p3659_p4 }
 0x163   : > { %p3657_p0 = pneg %p3656_p10 }
 0x164   : > { %p3663_p11 = por %p3662_p1, %p3661_p8 }
 0x166   : > { %p3664_p7 = pnand %p3663_p11, %p3657_p0 }
 0x168   : > { %3667 = shalt.err (!%p3664_p7)
}
 0x169   : > { %s3668_s25 = scalar_lea.vmem %s4488_s28, 512  ;;  %s3980_s5 = smov [#allocation17]  }
 0x16a   : > { %p3669_p5 = scmp.ne.s32.totalorder %s4488_s28, %s3668_s25  ;;  %s3672_s23 = sshll.u32 %s3980_s5, 4  ;;  %s3673_s23 = int_to_ptr.vmem [resolvable:$false] %s3672_s23 }
 0x16b   : > { %s3674_s22 = scalar_lea.vmem %s3673_s23, 1024  ;;  %p3675_p9 = scmp.lt.s32.totalorder %s4488_s28, %s3673_s23 }
 0x16c   : > { %p3670_p13 = pnand %p3669_p5, %p5041_p3  ;;  %p3676_p6 = scmp.lt.s32.totalorder %s3674_s22, %s3668_s25 }
 0x16e   : > { %p3671_p12 = pneg %p3670_p13  ;;  %p3677_p10 = por %p3676_p6, %p3675_p9 }
 0x170   : > { %p3678_p4 = pnand %p3677_p10, %p3671_p12 }
 0x172   : > { %3681 = shalt.err (!%p3678_p4)
}
 0x173   : > { %s5048_s2 = smov 8   ;;  %s5049_s27 = smov 128  }
 0x174   : > { %3183 = dma.hbm_to_vmem [thread:$0]  (%p5041_p3), %s4467_s3, 512, %s4488_s28, %s4314_s13, %s5049_s27, %s5049_s27, %s5048_s2  }
 0x175   : > { %s742_s0 = scalar_lea.vmem [#allocation18], %s4302_s18  ;;  %s4526_s25 = scalar_lea.hbm %s4968_s11, %s4371_s16 }
 0x176   : > { %s749_s21 = sshll.u32 %s742_s0, 4  ;;  %s3682_s5 = scalar_lea.hbm %s4494_s29, 16  ;;  %s750_s21 = int_to_ptr.vmem [resolvable:$true] %s749_s21 }
 0x177   : > { %p3683_p0 = scmp.ne.s32.totalorder %s4494_s29, %s3682_s5  ;;  %s3686_s6 = scalar_lea.hbm %s4967_s10, 48 }
 0x178   : > { %p3687_p1 = scmp.lt.u32.totalorder %s4494_s29, %s4967_s10  ;;  %p3688_p11 = scmp.lt.u32.totalorder %s3686_s6, %s3682_s5 }
 0x179   : > { %p3684_p2 = pnand %p3683_p0, %p5041_p3  ;;  %p3690_p5 = scmp.lt.u32.totalorder %s3682_s5, %s4494_s29 }
 0x17a   : > { %p3689_p7 = por %p3688_p11, %p3687_p1 }
 0x17b   : > { %p3685_p8 = pneg %p3684_p2 }
 0x17c   : > { %p3691_p13 = por %p3690_p5, %p3689_p7 }
 0x17e   : > { %p3692_p12 = pnand %p3691_p13, %p3685_p8 }
 0x180   : > { %3695 = shalt.err (!%p3692_p12)
}
 0x181   : > { %s3696_s3 = scalar_lea.vmem %s750_s21, 16  ;;  %s3981_s28 = smov [#allocation18]  }
 0x182   : > { %p3697_p9 = scmp.ne.s32.totalorder %s750_s21, %s3696_s3  ;;  %s3700_s0 = sshll.u32 %s3981_s28, 4  ;;  %s3701_s0 = int_to_ptr.vmem [resolvable:$false] %s3700_s0 }
 0x183   : > { %s3702_s1 = scalar_lea.vmem %s3701_s0, 32  ;;  %p3703_p4 = scmp.lt.s32.totalorder %s750_s21, %s3701_s0 }
 0x184   : > { %p3698_p6 = pnand %p3697_p9, %p5041_p3  ;;  %p3704_p0 = scmp.lt.s32.totalorder %s3702_s1, %s3696_s3 }
 0x186   : > { %p3699_p10 = pneg %p3698_p6  ;;  %p3705_p2 = por %p3704_p0, %p3703_p4 }
 0x188   : > { %p3706_p1 = pnand %p3705_p2, %p3699_p10 }
 0x18a   : > { %3709 = shalt.err (!%p3706_p1)
}
 0x18b   : > { %3184 = dma.hbm_to_vmem [thread:$0]  (%p5041_p3), %s4494_s29, 16, %s750_s21, %s4314_s13  }
 0x18c   : > { %s759_s6 = scalar_lea.vmem [#allocation19], %s4302_s18  ;;  %s4551_s5 = scalar_lea.hbm %s4969_s12, %s4371_s16 }
 0x18d   : > { %s766_s7 = sshll.u32 %s759_s6, 4  ;;  %s3710_s23 = scalar_lea.hbm %s4526_s25, 16  ;;  %s767_s7 = int_to_ptr.vmem [resolvable:$true] %s766_s7 }
 0x18e   : > { %p3711_p8 = scmp.ne.s32.totalorder %s4526_s25, %s3710_s23  ;;  %s3714_s28 = scalar_lea.hbm %s4968_s11, 48 }
 0x18f   : > { %p3715_p5 = scmp.lt.u32.totalorder %s4526_s25, %s4968_s11  ;;  %p3716_p13 = scmp.lt.u32.totalorder %s3714_s28, %s3710_s23 }
 0x190   : > { %p3712_p11 = pnand %p3711_p8, %p5041_p3  ;;  %p3718_p9 = scmp.lt.u32.totalorder %s3710_s23, %s4526_s25 }
 0x191   : > { %p3717_p12 = por %p3716_p13, %p3715_p5 }
 0x192   : > { %p3713_p7 = pneg %p3712_p11 }
 0x193   : > { %p3719_p6 = por %p3718_p9, %p3717_p12 }
 0x195   : > { %p3720_p10 = pnand %p3719_p6, %p3713_p7 }
 0x197   : > { %3723 = shalt.err (!%p3720_p10)
}
 0x198   : > { %s3724_s29 = scalar_lea.vmem %s767_s7, 16  ;;  %s3982_s21 = smov [#allocation19]  }
 0x199   : > { %p3725_p4 = scmp.ne.s32.totalorder %s767_s7, %s3724_s29  ;;  %s3728_s6 = sshll.u32 %s3982_s21, 4  ;;  %s3729_s6 = int_to_ptr.vmem [resolvable:$false] %s3728_s6 }
 0x19a   : > { %s3730_s8 = scalar_lea.vmem %s3729_s6, 32  ;;  %p3731_p1 = scmp.lt.s32.totalorder %s767_s7, %s3729_s6 }
 0x19b   : > { %p3726_p0 = pnand %p3725_p4, %p5041_p3  ;;  %p3732_p8 = scmp.lt.s32.totalorder %s3730_s8, %s3724_s29 }
 0x19d   : > { %p3727_p2 = pneg %p3726_p0  ;;  %p3733_p11 = por %p3732_p8, %p3731_p1 }
 0x19f   : > { %p3734_p5 = pnand %p3733_p11, %p3727_p2 }
 0x1a1   : > { %3737 = shalt.err (!%p3734_p5)
}
 0x1a2   : > { %3185 = dma.hbm_to_vmem [thread:$0]  (%p5041_p3), %s4526_s25, 16, %s767_s7, %s4314_s13  }
 0x1a3   : > { %s776_s4 = scalar_lea.vmem [#allocation20], %s4302_s18  ;;  %s5050_s28 = sld [smem:[#allocation53_spill]] }
 0x1a4   : > { %s783_s23 = sshll.u32 %s776_s4, 4  ;;  %s3738_s1 = scalar_lea.hbm %s4551_s5, 16  ;;  %s784_s23 = int_to_ptr.vmem [resolvable:$true] %s783_s23 }
 0x1a5   : > { %p3739_p7 = scmp.ne.s32.totalorder %s4551_s5, %s3738_s1  ;;  %s3742_s6 = scalar_lea.hbm %s4969_s12, 48 }
 0x1a6   : > { %p3743_p9 = scmp.lt.u32.totalorder %s4551_s5, %s4969_s12  ;;  %p3744_p6 = scmp.lt.u32.totalorder %s3742_s6, %s3738_s1 }
 0x1a7   : > { %p3740_p13 = pnand %p3739_p7, %p5041_p3  ;;  %p3746_p4 = scmp.lt.u32.totalorder %s3738_s1, %s4551_s5 }
 0x1a8   : > { %p3745_p10 = por %p3744_p6, %p3743_p9 }
 0x1a9   : > { %s4576_s0 = scalar_lea.hbm %s5050_s28, %s4420_s20  ;;  %p3741_p12 = pneg %p3740_p13 }
 0x1aa   : > { %p3747_p0 = por %p3746_p4, %p3745_p10 }
 0x1ac   : > { %p3748_p2 = pnand %p3747_p0, %p3741_p12 }
 0x1ae   : > { %3751 = shalt.err (!%p3748_p2)
}
 0x1af   : > { %s3752_s20 = scalar_lea.vmem %s784_s23, 16  ;;  %s3983_s25 = smov [#allocation20]  }
 0x1b0   : > { %p3753_p1 = scmp.ne.s32.totalorder %s784_s23, %s3752_s20  ;;  %s3756_s7 = sshll.u32 %s3983_s25, 4  ;;  %s3757_s7 = int_to_ptr.vmem [resolvable:$false] %s3756_s7 }
 0x1b1   : > { %s3758_s4 = scalar_lea.vmem %s3757_s7, 32  ;;  %p3759_p5 = scmp.lt.s32.totalorder %s784_s23, %s3757_s7 }
 0x1b2   : > { %p3754_p8 = pnand %p3753_p1, %p5041_p3  ;;  %p3760_p7 = scmp.lt.s32.totalorder %s3758_s4, %s3752_s20 }
 0x1b4   : > { %p3755_p11 = pneg %p3754_p8  ;;  %p3761_p13 = por %p3760_p7, %p3759_p5 }
 0x1b6   : > { %p3762_p6 = pnand %p3761_p13, %p3755_p11 }
 0x1b8   : > { %3765 = shalt.err (!%p3762_p6)
}
 0x1b9   : > { %3186 = dma.hbm_to_vmem [thread:$0]  (%p5041_p3), %s4551_s5, 16, %s784_s23, %s4314_s13  }
 0x1ba   : > { %s794_s9 = scalar_lea.vmem [#allocation21], %s4399_s15  ;;  %s5051_s29 = sld [smem:[#allocation54_spill]] }
 0x1bb   : > { %s801_s22 = sshll.u32 %s794_s9, 4  ;;  %s3766_s8 = scalar_lea.hbm %s4576_s0, 512  ;;  %s4597_s22 = int_to_ptr.vmem [resolvable:$true] %s801_s22 }
 0x1bc   : > { %p3767_p12 = scmp.ne.s32.totalorder %s4576_s0, %s3766_s8  ;;  %s3770_s7 = scalar_lea.hbm %s5050_s28, 1536 }
 0x1bd   : > { %p3771_p4 = scmp.lt.u32.totalorder %s4576_s0, %s5050_s28  ;;  %p3772_p0 = scmp.lt.u32.totalorder %s3770_s7, %s3766_s8 }
 0x1be   : > { %p3768_p9 = pnand %p3767_p12, %p5041_p3  ;;  %p3774_p1 = scmp.lt.u32.totalorder %s3766_s8, %s4576_s0 }
 0x1bf   : > { %p3773_p2 = por %p3772_p0, %p3771_p4 }
 0x1c0   : > { %s5052_s21 = smov %s5051_s29  ;;  %s4603_s6 = scalar_lea.hbm %s5051_s29, %s4371_s16 }
 0x1c1   : > { %p3769_p10 = pneg %p3768_p9  ;;  %p3775_p8 = por %p3774_p1, %p3773_p2 }
 0x1c3   : > { %p3776_p11 = pnand %p3775_p8, %p3769_p10 }
 0x1c5   : > { %3779 = shalt.err (!%p3776_p11)
}
 0x1c6   : > { %s3780_s15 = scalar_lea.vmem %s4597_s22, 512  ;;  %s3984_s23 = smov [#allocation21]  }
 0x1c7   : > { %p3781_p5 = scmp.ne.s32.totalorder %s4597_s22, %s3780_s15  ;;  %s3784_s9 = sshll.u32 %s3984_s23, 4  ;;  %s3785_s9 = int_to_ptr.vmem [resolvable:$false] %s3784_s9 }
 0x1c8   : > { %s3786_s3 = scalar_lea.vmem %s3785_s9, 1024  ;;  %p3787_p6 = scmp.lt.s32.totalorder %s4597_s22, %s3785_s9 }
 0x1c9   : > { %p3782_p7 = pnand %p3781_p5, %p5041_p3  ;;  %p3788_p12 = scmp.lt.s32.totalorder %s3786_s3, %s3780_s15 }
 0x1cb   : > { %p3783_p13 = pneg %p3782_p7  ;;  %p3789_p9 = por %p3788_p12, %p3787_p6 }
 0x1cd   : > { %p3790_p4 = pnand %p3789_p9, %p3783_p13 }
 0x1cf   : > { %3793 = shalt.err (!%p3790_p4)
}
 0x1d0   : > { %3187 = dma.hbm_to_vmem [thread:$0]  (%p5041_p3), %s4576_s0, 512, %s4597_s22, %s4314_s13, %s5049_s27, %s5049_s27, %s5048_s2  }
 0x1d1   : > { %s814_s1 = scalar_lea.vmem [#allocation22], %s4302_s18  ;;  %s2859_s8 = sshll.u32 %s4302_s18, 7 }
 0x1d2   : > { %s821_s29 = sshll.u32 %s814_s1, 4  ;;  %s3794_s20 = scalar_lea.hbm %s4603_s6, 16  ;;  %s822_s29 = int_to_ptr.vmem [resolvable:$true] %s821_s29 }
 0x1d3   : > { %p3795_p10 = scmp.ne.s32.totalorder %s4603_s6, %s3794_s20  ;;  %s3798_s4 = scalar_lea.hbm %s5052_s21, 48 }
 0x1d4   : > { %p3799_p1 = scmp.lt.u32.totalorder %s4603_s6, %s5052_s21  ;;  %p3800_p8 = scmp.lt.u32.totalorder %s3798_s4, %s3794_s20 }
 0x1d5   : > { %p3796_p0 = pnand %p3795_p10, %p5041_p3  ;;  %p3802_p5 = scmp.lt.u32.totalorder %s3794_s20, %s4603_s6 }
 0x1d6   : > { %p3801_p11 = por %p3800_p8, %p3799_p1 }
 0x1d7   : > { %p3797_p2 = pneg %p3796_p0 }
 0x1d8   : > { %p3803_p7 = por %p3802_p5, %p3801_p11 }
 0x1da   : > { %p3804_p13 = pnand %p3803_p7, %p3797_p2 }
 0x1dc   : > { %3807 = shalt.err (!%p3804_p13)
}
 0x1dd   : > { %s3808_s0 = scalar_lea.vmem %s822_s29, 16  ;;  %s3985_s22 = smov [#allocation22]  }
 0x1de   : > { %p3809_p6 = scmp.ne.s32.totalorder %s822_s29, %s3808_s0  ;;  %s3812_s23 = sshll.u32 %s3985_s22, 4  ;;  %s3813_s23 = int_to_ptr.vmem [resolvable:$false] %s3812_s23 }
 0x1df   : > { %s3814_s9 = scalar_lea.vmem %s3813_s23, 32  ;;  %p3815_p4 = scmp.lt.s32.totalorder %s822_s29, %s3813_s23 }
 0x1e0   : > { %p3810_p12 = pnand %p3809_p6, %p5041_p3  ;;  %p3816_p10 = scmp.lt.s32.totalorder %s3814_s9, %s3808_s0 }
 0x1e2   : > { %p3811_p9 = pneg %p3810_p12  ;;  %p3817_p0 = por %p3816_p10, %p3815_p4 }
 0x1e4   : > { %p3818_p1 = pnand %p3817_p0, %p3811_p9 }
 0x1e6   : > { %3821 = shalt.err (!%p3818_p1)
}
 0x1e7   : > { %3188 = dma.hbm_to_vmem [thread:$0]  (%p5041_p3), %s4603_s6, 16, %s822_s29, %s4314_s13  }
 0x1e8   : > { %s2921_s3 = sshll.u32 %s3960_s14, 11  ;;  %s832_s1 = scalar_lea.vmem [#allocation23], %s2859_s8 }
 0x1e9   : > { %s839_s20 = sshll.u32 %s832_s1, 4  ;;  %s5053_s4 = sld [smem:[#allocation55_spill]]  ;;  %s4658_s20 = int_to_ptr.vmem [resolvable:$true] %s839_s20 }
 0x1ef   : > { %s5054_s5 = smov %s5053_s4  ;;  %s4656_s15 = scalar_lea.hbm %s5053_s4, %s2921_s3 }
 0x1f0   : > { %s3822_s0 = scalar_lea.hbm %s4656_s15, 2048  ;;  %s3826_s29 = scalar_lea.hbm %s5054_s5, 6144 }
 0x1f1   : > { %p3823_p2 = scmp.ne.s32.totalorder %s4656_s15, %s3822_s0  ;;  %p3827_p5 = scmp.lt.u32.totalorder %s4656_s15, %s5054_s5 }
 0x1f2   : > { %p3828_p7 = scmp.lt.u32.totalorder %s3826_s29, %s3822_s0  ;;  %p3830_p6 = scmp.lt.u32.totalorder %s3822_s0, %s4656_s15 }
 0x1f3   : > { %p3824_p8 = pnand %p3823_p2, %p5041_p3 }
 0x1f4   : > { %p3829_p13 = por %p3828_p7, %p3827_p5 }
 0x1f5   : > { %p3825_p11 = pneg %p3824_p8 }
 0x1f6   : > { %p3831_p12 = por %p3830_p6, %p3829_p13 }
 0x1f8   : > { %p3832_p9 = pnand %p3831_p12, %p3825_p11 }
 0x1fa   : > { %3835 = shalt.err (!%p3832_p9)
}
 0x1fb   : > { %s3836_s23 = scalar_lea.vmem %s4658_s20, 2048  ;;  %s3986_s9 = smov [#allocation23]  }
 0x1fc   : > { %p3837_p4 = scmp.ne.s32.totalorder %s4658_s20, %s3836_s23  ;;  %s3840_s3 = sshll.u32 %s3986_s9, 4  ;;  %s3841_s3 = int_to_ptr.vmem [resolvable:$false] %s3840_s3 }
 0x1fd   : > { %s3842_s1 = scalar_lea.vmem %s3841_s3, 4096  ;;  %p3843_p1 = scmp.lt.s32.totalorder %s4658_s20, %s3841_s3 }
 0x1fe   : > { %p3838_p10 = pnand %p3837_p4, %p5041_p3  ;;  %p3844_p2 = scmp.lt.s32.totalorder %s3842_s1, %s3836_s23 }
 0x200   : > { %p3839_p0 = pneg %p3838_p10  ;;  %p3845_p8 = por %p3844_p2, %p3843_p1 }
 0x202   : > { %p3846_p5 = pnand %p3845_p8, %p3839_p0 }
 0x204   : > { %3849 = shalt.err (!%p3846_p5)
}
 0x205   : > { %3189 = dma.hbm_to_vmem [thread:$0]  (%p5041_p3), %s4656_s15, 2048, %s4658_s20, %s4314_s13, %s5049_s27, %s5049_s27, %s5048_s2  }
 0x206   : > { %s5055_s4 = sld [smem:[#allocation56_spill]]  ;;  %s852_s6 = scalar_lea.vmem [#allocation24], %s4302_s18 }
 0x207   : > { %s859_s29 = sshll.u32 %s852_s6, 4  ;;  %s860_s29 = int_to_ptr.vmem [resolvable:$true] %s859_s29 }
 0x20c   : > { %s5056_s0 = smov %s5055_s4  ;;  %s4689_s14 = scalar_lea.hbm %s5055_s4, %s4371_s16 }
 0x20d   : > { %s3850_s8 = scalar_lea.hbm %s4689_s14, 16  ;;  %s3854_s2 = scalar_lea.hbm %s5056_s0, 48 }
 0x20e   : > { %p3851_p11 = scmp.ne.s32.totalorder %s4689_s14, %s3850_s8  ;;  %p3855_p6 = scmp.lt.u32.totalorder %s4689_s14, %s5056_s0 }
 0x20f   : > { %p3856_p12 = scmp.lt.u32.totalorder %s3854_s2, %s3850_s8  ;;  %p3858_p4 = scmp.lt.u32.totalorder %s3850_s8, %s4689_s14 }
 0x210   : > { %p3852_p7 = pnand %p3851_p11, %p5041_p3 }
 0x211   : > { %p3857_p9 = por %p3856_p12, %p3855_p6 }
 0x212   : > { %p3853_p13 = pneg %p3852_p7 }
 0x213   : > { %p3859_p10 = por %p3858_p4, %p3857_p9 }
 0x215   : > { %p3860_p0 = pnand %p3859_p10, %p3853_p13 }
 0x217   : > { %3863 = shalt.err (!%p3860_p0)
}
 0x218   : > { %s3864_s18 = scalar_lea.vmem %s860_s29, 16  ;;  %s3987_s16 = smov [#allocation24]  }
 0x219   : > { %p3865_p1 = scmp.ne.s32.totalorder %s860_s29, %s3864_s18  ;;  %s3868_s15 = sshll.u32 %s3987_s16, 4  ;;  %s3869_s15 = int_to_ptr.vmem [resolvable:$false] %s3868_s15 }
 0x21a   : > { %s3870_s9 = scalar_lea.vmem %s3869_s15, 32  ;;  %p3871_p5 = scmp.lt.s32.totalorder %s860_s29, %s3869_s15 }
 0x21b   : > { %p3866_p2 = pnand %p3865_p1, %p5041_p3  ;;  %p3872_p11 = scmp.lt.s32.totalorder %s3870_s9, %s3864_s18 }
 0x21d   : > { %p3867_p8 = pneg %p3866_p2  ;;  %p3873_p7 = por %p3872_p11, %p3871_p5 }
 0x21f   : > { %p3874_p6 = pnand %p3873_p7, %p3867_p8 }
 0x221   : > { %3877 = shalt.err (!%p3874_p6)
}
 0x222   : > { %3190 = dma.hbm_to_vmem [thread:$0]  (%p5041_p3), %s4689_s14, 16, %s860_s29, %s4314_s13  }
 0x223 PF: > { %s5057_s3 = sld [smem:[#allocation42_spill]] }
 0x229   : > { %p5058_p13 = scmp.ne.s32.totalorder %s5057_s3, 0 }
 0x22a   : > { %s5059_s1 = sld [smem:[#allocation38_spill]] (!%p5058_p13) }
 0x22b   : > { %868 = sbr.rel (%p5058_p13) target bundleno = 4128 (0x1020), region = 96 }
 0x230   : > { %p5060_p12 = scmp.eq.s32.totalorder (!%p5058_p13), %s5059_s1, 0 }
 0x232   : > { %3923 = dma.done.wait (%p5060_p12), [#allocation7], 256   ;;  %p5061_p9 = pmov %p5060_p12 }
 0x234   : > { %3925 = vsyncadd (%p5061_p9), [#allocation7], 4294967040  ;;  %p5062_p4 = pmov %p5061_p9 }
 0x236   : > { %3927 = dma.done.wait (%p5062_p4), [#allocation10], 256   ;;  %p5063_p10 = pmov %p5062_p4 }
 0x237   : > { %s5064_s24 = sld [smem:[#allocation37_spill]]  ;;  %s5065_s25 = sld [smem:[#allocation41_spill]] }
 0x238   : > { %3929 = vsyncadd (%p5063_p10), [#allocation10], 4294967040  ;;  %s878_s13 = sand.u32 1, %s5059_s1  }
 0x239   : > { %s879_s14 = scalar_lea.sflag [#allocation7], %s878_s13 }
 0x23d   : > { %s4722_s7 = sand.u32 1, %s5064_s24   ;;  %p5066_p3 = scmp.ne.s32.totalorder %s5065_s25, 0 }
 0x23e   : > { %s2866_s4 = sshll.u32 %s4722_s7, 1 }
 0x23f   : > { %s4725_s6 = scalar_lea.vmem [#allocation11], %s2866_s4 }
 0x240   : > { %3931 = dma.done.wait (%p5066_p3), %s879_s14, 3808  }
 0x241   : > { %3933 = vsyncadd (%p5066_p3), %s879_s14, 4294963488  ;;  %s2867_s29 = sshll.u32 %s4722_s7, 2  ;;  %s2868_s8 = sshll.u32 %s4722_s7, 5 }
 0x242   : > { %s2871_s22 = sshll.u32 %s4722_s7, 7  ;;  %s4734_s23 = scalar_lea.vmem [#allocation12], %s2867_s29 }
 0x243   : > { %s899_s2 = scalar_lea.vmem [#allocation13], %s4722_s7  ;;  %s907_s27 = scalar_lea.vmem [#allocation14], %s4722_s7 }
 0x244   : > { %s4738_s20 = scalar_lea.vmem [#allocation15], %s2868_s8  ;;  %s924_s18 = scalar_lea.vmem [#allocation16], %s4722_s7 }
 0x245   : > { %s4741_s16 = scalar_lea.vmem [#allocation17], %s2868_s8  ;;  %s941_s15 = scalar_lea.vmem [#allocation18], %s4722_s7 }
 0x246   : > { %s949_s9 = scalar_lea.vmem [#allocation19], %s4722_s7  ;;  %s957_s3 = scalar_lea.vmem [#allocation20], %s4722_s7 }
 0x247   : > { %s4746_s24 = scalar_lea.vmem [#allocation21], %s2868_s8  ;;  %s974_s25 = scalar_lea.vmem [#allocation22], %s4722_s7 }
 0x248   : > { %s4749_s13 = scalar_lea.vmem [#allocation23], %s2871_s22  ;;  %s991_s4 = scalar_lea.vmem [#allocation24], %s4722_s7 }
 0x249   : > { %p5067_p0 = pmov %p5062_p4 }
 0x24b   : > { %3935 = dma.done.wait (%p5067_p0), [#allocation10], 16   ;;  %p5068_p1 = pmov %p5067_p0 }
 0x24c   : > { %p5069_p2 = pmov %p5067_p0 }
 0x24d   : > { %3937 = vsyncadd (%p5068_p1), [#allocation10], 4294967280 }
 0x24e   : > { %3939 = dma.done.wait (%p5069_p2), [#allocation27], 528   ;;  %p5070_p8 = pmov %p5067_p0 }
 0x24f   : > { %p5071_p5 = scmp.ne.s32.totalorder %s5059_s1, 0 }
 0x250   : > { %3941 = vsyncadd (%p5070_p8), [#allocation27], 4294966768  ;;  %v1114_v0 = vld [vmem:[#allocation6] sm:$0xff] (!%p5071_p5)  ;;  %vm1116_vm0 = vcmask (!%p5071_p5), 261120   ;;  %v1115_v1 = vld [vmem:[#allocation6 + $0x8] sm:$0xff] (!%p5071_p5) }
 0x251   : > { %1113 = sbr.rel (%p5071_p5) target bundleno = 600 (0x258), region = 176  ;;  %1117 = vst.msk [vmem:[#allocation2] sm:$0xff] (!%p5071_p5), %vm1116_vm0, %v1114_v0  ;;  %1118 = vst.msk [vmem:[#allocation2 + $0x8] sm:$0xff] (!%p5071_p5), %vm1116_vm0, %v1115_v1 }
 0x258 PF: > { %s5072_s14 = sld [smem:[#allocation38_spill]] }
 0x25e   : > { %p2876_p11 = scmp.le.s32.totalorder %s5072_s14, 0 }
 0x25f   : > { %v1123_v2 = vld [vmem:[%s4725_s6] sm:$0x3] (!%p2876_p11)  ;;  %vm1124_vm1 = vcmask (!%p2876_p11), 254976   ;;  %v1127_v3 = vld [vmem:[%s4734_s23] sm:$0x3] (!%p2876_p11) }
 0x260   : > { %1122 = sbr.rel (%p2876_p11) target bundleno = 615 (0x267), region = 180  ;;  %1125 = vst.msk [vmem:[#allocation2 + $0x1] sm:$0x3] (!%p2876_p11), %vm1124_vm1, %v1123_v2  ;;  %1126 = vst.msk [vmem:[#allocation2 + $0x9] sm:$0x3] (!%p2876_p11), %vm1124_vm1, %v1123_v2 }
 0x261   : > { %1129 = vst.msk [vmem:[#allocation2 + $0x3] sm:$0x3] (!%p2876_p11), %vm1124_vm1, %v1127_v3  ;;  %v1128_v4 = vld [vmem:[%s4734_s23 + $0x2] sm:$0x3] (!%p2876_p11) }
 0x262   : > { %1130 = vst.msk [vmem:[#allocation2 + $0xb] sm:$0x3] (!%p2876_p11), %vm1124_vm1, %v1128_v4 }
 0x267 PF: > { %vm1135_vm2 = vcmask 261120   ;;  %v1179_v19 = vld [vmem:[%s4738_s20] sm:$0xff]  ;;  %v1180_v20 = vld [vmem:[%s4738_s20 + $0x8] sm:$0xff]  ;;  %v1181_v21 = vld [vmem:[%s4738_s20 + $0x10] sm:$0xff]  ;;  %v3988_v41 = vmov 0.0   ;;  %vm3989_vm3 = vmmov 0  }
 0x268   : > { %v4766_v5 = vld [vmem:[#allocation2] sm:$0xff]  ;;  %v3103_v22 = vpack.c.bf16 %v1180_v20, %v1179_v19  ;;  %3022 = vmatprep.subr.mxu0 %v3988_v41  ;;  %3024 = vmatprep.mubr.msk.f32.mxu0 %vm3989_vm3, %v3988_v41  ;;  %s3990_s1 = smov 96   ;;  %vm1280_vm4 = vcmask 130048   ;;  %vm1432_vm5 = vcmask 64512   ;;  %v4817_v53 = vld [vmem:[#allocation9 + $0x8] sm:$0xff]  ;;  %s3991_s6 = smov 64  }
 0x269   : > { %v4768_v6 = vld [vmem:[#allocation2 + $0x8] sm:$0xff]  ;;  %v1136_v7 = vsel %vm1135_vm2, %v4766_v5, 0.0  ;;  %v1182_v23 = vld [vmem:[%s4738_s20 + $0x18] sm:$0xff]  ;;  %s3992_s29 = smov 80   ;;  %s3993_s8 = smov 112  }
 0x26a   : > { %1137 = vadd.xlane.f32.xlu0 %v1136_v7  ;;  %v1139_v8 = vsel %vm1135_vm2, %v4768_v6, 0.0  ;;  %v3107_v24 = vpack.c.bf16 %v1182_v23, %v1181_v21  ;;  %3104 = vmatprep.subr.bf16.mxu1 %v3103_v22  ;;  %v2877_v32 = vld [vmem:[%s899_s2] ss:$0 sm:$0xff]  ;;  %v4814_v49 = vld [vmem:[#allocation9] sm:$0xff]  ;;  %s3994_s22 = smov 48   ;;  %s5073_s23 = sld [smem:[#allocation38_spill]] }
 0x26b   : > { %3106 = vmatpush3.bf16.msra.mxu1 %v3103_v22  ;;  %v2878_v34 = vld [vmem:[%s907_s27] ss:$0 sm:$0xff] }
 0x26c   : > { %3108 = vmatprep.subr.bf16.mxu1 %v3107_v24  ;;  %v2879_v42 = vld [vmem:[%s924_s18] ss:$0 sm:$0xff] }
 0x26e   : > { %1140 = vadd.xlane.f32.xlu0 %v1139_v8 }
 0x26f   : > { %3110 = vmatpush3.bf16.msra.mxu1 %v3107_v24 }
 0x270   : > { %2992 = vmatprep.subr.mxu1 %v3988_v41  ;;  %p2907_p7 = scmp.ne.s32.totalorder %s5073_s23, 2 }
 0x271   : > { %s2368_s2 = sld [smem:[#allocation5]] (!%p2907_p7)  ;;  %s2908_s27 = sld [smem:[#allocation5 + $0x1]] (!%p2907_p7)  ;;  %vm2371_vm6 = vcmask (!%p2907_p7), 253952   ;;  %vm2381_vm7 = vcmask (!%p2907_p7), 254976   ;;  %vm3996_vm8 = vmmov (!%p2907_p7), 0  }
 0x277   : > { %s2369_s7 = scalar_lea.vmem (!%p2907_p7), [#allocation2], %s2368_s2  ;;  %s2646_s20 = scalar_lea.vmem (!%p2907_p7), [#allocation2], %s2908_s27 }
 0x2f7   : > { %v1138_v9 = vpop.xlane.xlu0 %1137 }
 0x2f8   : > { %v1143_v10 = vmul.f32 0.03125, %v1138_v9 }
 0x2fa   : > { %v1145_v11 = vsub.f32 %v4766_v5, %v1143_v10 }
 0x2fb   : > { %v1141_v12 = vpop.xlane.xlu0 %1140 }
 0x2fc   : > { %v1144_v13 = vmul.f32 0.03125, %v1141_v12  ;;  %v1147_v14 = vmul.f32 %v1145_v11, %v1145_v11 }
 0x2fe   : > { %v1146_v15 = vsub.f32 %v4768_v6, %v1144_v13  ;;  %v1149_v16 = vsel %vm1135_vm2, %v1147_v14, 0.0 }
 0x2ff   : > { %1150 = vadd.xlane.f32.xlu1 %v1149_v16 }
 0x300   : > { %v1148_v17 = vmul.f32 %v1146_v15, %v1146_v15 }
 0x302   : > { %v1152_v18 = vsel %vm1135_vm2, %v1148_v17, 0.0 }
 0x303   : > { %1153 = vadd.xlane.f32.xlu1 %v1152_v18 }
 0x38c   : > { %v1151_v25 = vpop.xlane.xlu1 %1150 }
 0x38d   : > { %v1155_v26 = vmul.f32 0.03125, %v1151_v25 }
 0x38f   : > { %v1157_v27 = vadd.f32 1e-05, %v1155_v26 }
 0x390   : > { %v1154_v28 = vpop.xlane.xlu1 %1153 }
 0x391   : > { %3302 = vrsqrt.f32 %v1157_v27  ;;  %v1156_v29 = vmul.f32 0.03125, %v1154_v28 }
 0x393   : > { %v1158_v30 = vadd.f32 1e-05, %v1156_v29 }
 0x395   : > { %3304 = vrsqrt.f32 %v1158_v30 }
 0x39b   : > { %v3303_v31 = vpop.eup %3302 }
 0x39c   : > { %v1161_v33 = vmul.f32 %v3303_v31, %v1145_v11 }
 0x39e   : > { %v1169_v35 = vmul.f32 %v2877_v32, %v1161_v33 }
 0x39f   : > { %v3305_v36 = vpop.eup %3304 }
 0x3a0   : > { %v1162_v37 = vmul.f32 %v3305_v36, %v1146_v15  ;;  %v1177_v38 = vadd.f32 %v2878_v34, %v1169_v35 }
 0x3a2   : > { %v1170_v39 = vmul.f32 %v2877_v32, %v1162_v37  ;;  %2989 = vmatprep.mubr.msk.f32.mxu1 %vm1135_vm2, %v1177_v38 }
 0x3a4   : > { %v1178_v40 = vadd.f32 %v2878_v34, %v1170_v39 }
 0x3a6   : > { %2990 = vmatmul.mubr.msk.f32.vlgmr.msra.gmra.mrb[0].mxu1 %vm1135_vm2, %v1178_v40 }
 0x3a7   : > { %2994 = vmatprep.mubr.msk.f32.mxu1 %vm3989_vm3, %v3988_v41 }
 0x479   : > { %v2991_v43 = vpop.f32.mrb[0].mxu1 }
 0x47a   : > { %v4796_v44 = vadd.f32 %v2991_v43, %v2879_v42  ;;  %v1262_v45 = vpop.f32.mrb[1].mxu1 }
 0x47b   : > { %v4798_v46 = vadd.f32 %v2879_v42, %v1262_v45 }
 0x47c   : > { %1356 = vrot.lane.b32.xlu1 %v4796_v44, %s3990_s1 }
 0x47d   : > { %1278 = vrot.lane.b32.xlu0 %v4798_v46, %s3990_s1 }
 0x4ee   : > { %v1357_v48 = vpop.permute.xlu1 %1356 }
 0x4ef   : > { %v1279_v47 = vpop.permute.xlu0 %1278 }
 0x4f0   : > { %2993 = vmatpush3.xpose.msk.msra.mxu1 %vm1280_vm4, %v1279_v47 }
 0x4f1   : > { %2997 = vmatprep.subr.mxu1 %v3988_v41 }
 0x4f3   : > { %2995 = vmatmul.mubr.msk.f32.vlgmr.msra.gmra.mrb[2].mxu1 %vm1280_vm4, %v4798_v46 }
 0x4f4   : > { %2998 = vmatpush3.xpose.msk.msra.mxu1 %vm1280_vm4, %v1357_v48  ;;  %2999 = vmatprep.mubr.msk.f32.mxu1 %vm3989_vm3, %v3988_v41 }
 0x4f5   : > { %3002 = vmatprep.subr.mxu1 %v3988_v41 }
 0x4f7   : > { %3000 = vmatmul.mubr.msk.f32.vlgmr.msra.gmra.mrb[4].mxu1 %vm1280_vm4, %v4796_v44 }
 0x4f8   : > { %3004 = vmatprep.mubr.msk.f32.mxu1 %vm3989_vm3, %v3988_v41 }
 0x5c6   : > { %v1351_v50 = vpop.f32.mrb[2].mxu1 }
 0x5c7   : > { %v1352_v51 = vadd.f32 %v1351_v50, %v4814_v49  ;;  %v2996_v52 = vpop.f32.mrb[3].mxu1  ;;  %v1275_v50 = vld [vmem:[%s4741_s16 + $0x10] sm:$0xff] }
 0x5c9   : > { %v1433_v54 = vsel %vm1432_vm5, %v1352_v51, -inf }
 0x5ca   : > { %1434 = vmax.xlane.f32.xlu1 %v1433_v54  ;;  %v1428_v55 = vpop.f32.mrb[4].mxu1 }
 0x5cb   : > { %v1429_v56 = vadd.f32 %v1428_v55, %v4817_v53  ;;  %v3001_v57 = vpop.f32.mrb[5].mxu1 }
 0x5cd   : > { %v1436_v58 = vsel %vm1432_vm5, %v1429_v56, -inf }
 0x5ce   : > { %1437 = vmax.xlane.f32.xlu0 %v1436_v58 }
 0x5db   : > { %1531 = vrot.lane.b32.xlu1 %v4796_v44, %s3991_s6 }
 0x5df   : > { %1609 = vrot.lane.b32.xlu1 %v4798_v46, %s3992_s29 }
 0x5e3   : > { %1607 = vrot.lane.b32.xlu1 %v4798_v46, %s3993_s8 }
 0x657   : > { %v1435_v59 = vpop.xlane.xlu1 %1434 }
 0x658   : > { %v1439_v60 = vsub.f32 %v1352_v51, %v1435_v59  ;;  %v1276_v51 = vld [vmem:[%s4741_s16 + $0x18] sm:$0xff] }
 0x659   : > { %v3111_v52 = vpack.c.bf16 %v1276_v51, %v1275_v50  ;;  %v2271_v50 = vld [vmem:[%s4749_s13 + $0x48] sm:$0xff] }
 0x65a   : > { %v1441_v61 = vmul.f32 1.442695, %v1439_v60  ;;  %v2898_v60 = vld [vmem:[%s941_s15] ss:$0 sm:$0xff] }
 0x65b   : > { %v1438_v62 = vpop.xlane.xlu0 %1437  ;;  %v1532_v7 = vpop.permute.xlu1 %1531 }
 0x65c   : > { %3306 = vpow2.f32 %v1441_v61  ;;  %v1440_v63 = vsub.f32 %v1429_v56, %v1438_v62 }
 0x65e   : > { %v1443_v0 = vmul.f32 1.442695, %v1440_v63 }
 0x65f   : > { %v1610_v8 = vpop.permute.xlu1 %1609 }
 0x660   : > { %3308 = vpow2.f32 %v1443_v0 }
 0x663   : > { %v1608_v9 = vpop.permute.xlu1 %1607 }
 0x666   : > { %v3307_v1 = vpop.eup %3306 }
 0x667   : > { %v1445_v2 = vsel %vm1432_vm5, %v3307_v1, 0.0 }
 0x668   : > { %1446 = vadd.xlane.f32.xlu0 %v1445_v2 }
 0x66a   : > { %v3309_v3 = vpop.eup %3308 }
 0x66b   : > { %v1448_v4 = vsel %vm1432_vm5, %v3309_v3, 0.0 }
 0x66c   : > { %1449 = vadd.xlane.f32.xlu1 %v1448_v4 }
 0x67d   : > { %1685 = vrot.lane.b32.xlu1 %v4796_v44, %s3993_s8 }
 0x67e   : > { %1455 = vrot.lane.b32.xlu0 %v4798_v46, %s3991_s6 }
 0x682   : > { %1687 = vrot.lane.b32.xlu0 %v4796_v44, %s3992_s29 }
 0x6f5   : > { %v1447_v10 = vpop.xlane.xlu0 %1446 }
 0x6f6   : > { %3310 = vrcp.f32 %v1447_v10 }
 0x6f9   : > { %v1450_v11 = vpop.xlane.xlu1 %1449  ;;  %v1456_v12 = vpop.permute.xlu0 %1455 }
 0x6fa   : > { %3312 = vrcp.f32 %v1450_v11  ;;  %3003 = vmatpush3.msra.mxu1 %v1456_v12 }
 0x6fb   : > { %3007 = vmatprep.subr.mxu1 %v3988_v41 }
 0x6fd   : > { %v1688_v17 = vpop.permute.xlu0 %1687  ;;  %v1686_v18 = vpop.permute.xlu1 %1685 }
 0x700   : > { %v3311_v13 = vpop.eup %3310 }
 0x701   : > { %v1453_v14 = vmul.f32 %v3311_v13, %v3307_v1 }
 0x703   : > { %3005 = vmatmul.mubr.msk.f32.vlgmr.msra.gmra.mrb[6].mxu1 %vm1432_vm5, %v1453_v14  ;;  %v2154_v14 = vld [vmem:[%s4746_s24] sm:$0xff] }
 0x704   : > { %v3313_v15 = vpop.eup %3312  ;;  %3008 = vmatpush3.msra.mxu1 %v1532_v7  ;;  %3009 = vmatprep.mubr.msk.f32.mxu1 %vm3989_vm3, %v3988_v41 }
 0x705   : > { %v1454_v16 = vmul.f32 %v3313_v15, %v3309_v3  ;;  %3012 = vmatprep.subr.mxu1 %v3988_v41  ;;  %v2155_v15 = vld [vmem:[%s4746_s24 + $0x8] sm:$0xff] }
 0x707   : > { %3010 = vmatmul.mubr.msk.f32.vlgmr.msra.gmra.mrb[8].mxu1 %vm1432_vm5, %v1454_v16  ;;  %v3119_v16 = vpack.c.bf16 %v2155_v15, %v2154_v14  ;;  %v2906_v15 = vld [vmem:[%s991_s4] ss:$0 sm:$0xff] }
 0x708   : > { %3014 = vmatprep.mubr.msk.f32.mxu1 %vm3989_vm3, %v3988_v41 }
 0x70b   : > { %3013 = vmatpush3.xpose.msk.msra.mxu1 %vm1280_vm4, %v1610_v8 }
 0x70c   : > { %3017 = vmatprep.subr.mxu1 %v3988_v41 }
 0x70e   : > { %3015 = vmatmul.mubr.msk.f32.vlgmr.msra.gmra.mrb[10].mxu1 %vm1280_vm4, %v1608_v9 }
 0x70f   : > { %3018 = vmatpush3.xpose.msk.msra.mxu1 %vm1280_vm4, %v1688_v17  ;;  %3019 = vmatprep.mubr.msk.f32.mxu1 %vm3989_vm3, %v3988_v41  ;;  %v2156_v17 = vld [vmem:[%s4746_s24 + $0x10] sm:$0xff] }
 0x710   : > { %3027 = vmatprep.subr.mxu1 %v3988_v41 }
 0x712   : > { %3020 = vmatmul.mubr.msk.f32.vlgmr.msra.gmra.mrb[12].mxu1 %vm1280_vm4, %v1686_v18  ;;  %v2157_v18 = vld [vmem:[%s4746_s24 + $0x18] sm:$0xff] }
 0x713   : > { %3029 = vmatprep.mubr.msk.f32.mxu1 %vm3989_vm3, %v3988_v41 }
 0x7d6   : > { %v1527_v19 = vpop.f32.mrb[6].mxu1 }
 0x7d7   : > { %v3006_v20 = vpop.f32.mrb[7].mxu1 }
 0x7da   : > { %v1603_v21 = vpop.f32.mrb[8].mxu1 }
 0x7db   : > { %v3011_v22 = vpop.f32.mrb[9].mxu1 }
 0x7e1   : > { %v1681_v23 = vpop.f32.mrb[10].mxu1 }
 0x7e2   : > { %v1682_v24 = vadd.f32 %v1681_v23, %v4814_v49  ;;  %v3016_v25 = vpop.f32.mrb[11].mxu1 }
 0x7e4   : > { %v1763_v26 = vsel %vm1432_vm5, %v1682_v24, -inf }
 0x7e5   : > { %1764 = vmax.xlane.f32.xlu0 %v1763_v26  ;;  %v1759_v27 = vpop.f32.mrb[12].mxu1 }
 0x7e6   : > { %v1760_v28 = vadd.f32 %v1759_v27, %v4817_v53  ;;  %v3021_v29 = vpop.f32.mrb[13].mxu1  ;;  %v1274_v53 = vld [vmem:[%s4741_s16 + $0x8] sm:$0xff]  ;;  %v2899_v27 = vld [vmem:[%s949_s9] ss:$0 sm:$0xff] }
 0x7e8   : > { %v1766_v30 = vsel %vm1432_vm5, %v1760_v28, -inf }
 0x7e9   : > { %1767 = vmax.xlane.f32.xlu1 %v1766_v30 }
 0x7fa   : > { %1861 = vrot.lane.b32.xlu1 %v4796_v44, %s3994_s22 }
 0x872   : > { %v1765_v31 = vpop.xlane.xlu0 %1764 }
 0x873   : > { %v1769_v32 = vsub.f32 %v1682_v24, %v1765_v31  ;;  %v2900_v31 = vld [vmem:[%s957_s3] ss:$0 sm:$0xff] }
 0x875   : > { %v1771_v33 = vmul.f32 1.442695, %v1769_v32 }
 0x876   : > { %v1768_v34 = vpop.xlane.xlu1 %1767 }
 0x877   : > { %3314 = vpow2.f32 %v1771_v33  ;;  %v1770_v35 = vsub.f32 %v1760_v28, %v1768_v34 }
 0x879   : > { %v1773_v36 = vmul.f32 1.442695, %v1770_v35 }
 0x87a   : > { %v1862_v37 = vpop.permute.xlu1 %1861 }
 0x87b   : > { %3316 = vpow2.f32 %v1773_v36  ;;  %3028 = vmatpush3.msra.mxu1 %v1862_v37  ;;  %v2262_v36 = vld [vmem:[%s4749_s13] sm:$0xff]  ;;  %v2263_v37 = vld [vmem:[%s4749_s13 + $0x8] sm:$0xff] }
 0x87c   : > { %3120 = vmatprep.subr.bf16.mxu1 %v3119_v16 }
 0x881   : > { %v3315_v38 = vpop.eup %3314 }
 0x882   : > { %v1775_v39 = vsel %vm1432_vm5, %v3315_v38, 0.0 }
 0x883   : > { %1776 = vadd.xlane.f32.xlu0 %v1775_v39  ;;  %v2264_v39 = vld [vmem:[%s4749_s13 + $0x10] sm:$0xff] }
 0x885   : > { %v3317_v40 = vpop.eup %3316 }
 0x886   : > { %v1778_v41 = vsel %vm1432_vm5, %v3317_v40, 0.0 }
 0x887   : > { %1779 = vadd.xlane.f32.xlu0 %v1778_v41 }
 0x89d   : > { %1785 = vrot.lane.b32.xlu0 %v4798_v46, %s3994_s22  ;;  %v1273_v46 = vld [vmem:[%s4741_s16] sm:$0xff] }
 0x89e   : > { %v3115_v54 = vpack.c.bf16 %v1274_v53, %v1273_v46  ;;  %v2273_v46 = vld [vmem:[%s4749_s13 + $0x58] sm:$0xff] }
 0x910   : > { %v1777_v42 = vpop.xlane.xlu0 %1776 }
 0x911   : > { %3318 = vrcp.f32 %v1777_v42  ;;  %v2266_v42 = vld [vmem:[%s4749_s13 + $0x20] sm:$0xff] }
 0x914   : > { %v1780_v43 = vpop.xlane.xlu0 %1779 }
 0x915   : > { %3320 = vrcp.f32 %v1780_v43  ;;  %v2267_v43 = vld [vmem:[%s4749_s13 + $0x28] sm:$0xff] }
 0x918   : > { %v1786_v44 = vpop.permute.xlu0 %1785 }
 0x919   : > { %3023 = vmatpush3.msra.mxu0 %v1786_v44  ;;  %v3135_v44 = vpack.c.bf16 %v2267_v43, %v2266_v42  ;;  %v2911_v43 = vld [vmem:[#allocation26] ss:$0 sm:$0xff] (!%p2907_p7) }
 0x91a   : > { %3112 = vmatprep.subr.bf16.mxu0 %v3111_v52 }
 0x91b   : > { %v3319_v45 = vpop.eup %3318 }
 0x91c   : > { %v1783_v47 = vmul.f32 %v3319_v45, %v3315_v38  ;;  %v3127_v38 = vpack.c.bf16 %v2263_v37, %v2262_v36  ;;  %v2268_v45 = vld [vmem:[%s4749_s13 + $0x30] sm:$0xff] }
 0x91e   : > { %3025 = vmatmul.mubr.msk.f32.vlgmr.msra.gmra.mrb[0].mxu0 %vm1432_vm5, %v1783_v47  ;;  %v2269_v47 = vld [vmem:[%s4749_s13 + $0x38] sm:$0xff] }
 0x91f   : > { %v3321_v48 = vpop.eup %3320  ;;  %3114 = vmatpush3.bf16.msra.mxu0 %v3111_v52  ;;  %v2272_v52 = vld [vmem:[%s4749_s13 + $0x50] sm:$0xff] }
 0x920   : > { %v1784_v49 = vmul.f32 %v3321_v48, %v3317_v40  ;;  %3116 = vmatprep.subr.bf16.mxu0 %v3115_v54  ;;  %v2265_v40 = vld [vmem:[%s4749_s13 + $0x18] sm:$0xff]  ;;  %v3139_v48 = vpack.c.bf16 %v2269_v47, %v2268_v45  ;;  %v3147_v53 = vpack.c.bf16 %v2273_v46, %v2272_v52 }
 0x921   : > { %v3131_v41 = vpack.c.bf16 %v2265_v40, %v2264_v39 }
 0x922   : > { %3030 = vmatmul.mubr.msk.f32.vlgmr.msra.gmra.mrb[14].mxu1 %vm1432_vm5, %v1784_v49  ;;  %v2270_v49 = vld [vmem:[%s4749_s13 + $0x40] sm:$0xff] }
 0x923   : > { %3122 = vmatpush3.bf16.msra.mxu1 %v3119_v16  ;;  %v3143_v51 = vpack.c.bf16 %v2271_v50, %v2270_v49 }
 0x9f1   : > { %v1857_v55 = vpop.f32.mrb[0].mxu0 }
 0x9f2   : > { %v3026_v56 = vpop.f32.mrb[1].mxu0  ;;  %3036 = vmatprep.mubr.msk.f32.mxu0 %vm1280_vm4, %v1857_v55  ;;  %v2275_v55 = vld [vmem:[%s4749_s13 + $0x68] sm:$0xff] }
 0x9f5   : > { %v1933_v57 = vpop.f32.mrb[14].mxu1 }
 0x9f6   : > { %v3031_v58 = vpop.f32.mrb[15].mxu1  ;;  %3037 = vmatmul.mubr.msk.f32.vlgmr.msra.gmra.mrb[2].mxu0 %vm1280_vm4, %v1933_v57  ;;  %v2276_v57 = vld [vmem:[%s4749_s13 + $0x70] sm:$0xff] }
 0x9f7   : > { %3118 = vmatpush3.bf16.msra.mxu0 %v3115_v54  ;;  %3043 = vmatprep.mubr.msk.f32.mxu0 %vm1280_vm4, %v1527_v19  ;;  %v3123_v19 = vpack.c.bf16 %v2157_v18, %v2156_v17  ;;  %v2274_v54 = vld [vmem:[%s4749_s13 + $0x60] sm:$0xff]  ;;  %v2277_v58 = vld [vmem:[%s4749_s13 + $0x78] sm:$0xff] }
 0x9f8   : > { %3128 = vmatprep.subr.bf16.mxu0 %v3127_v38  ;;  %v3151_v56 = vpack.c.bf16 %v2275_v55, %v2274_v54 }
 0x9f9   : > { %3124 = vmatprep.subr.bf16.mxu1 %v3123_v19 }
 0x9fa   : > { %3126 = vmatpush3.bf16.msra.mxu1 %v3123_v19 }
 0x9fe   : > { %3044 = vmatmul.mubr.msk.f32.vlgmr.msra.gmra.mrb[2].mxu0 %vm1280_vm4, %v1603_v21 }
 0x9ff   : > { %3130 = vmatpush3.bf16.msra.mxu0 %v3127_v38 }
 0xa00   : > { %3132 = vmatprep.subr.bf16.mxu0 %v3131_v41 }
 0xa03   : > { %3134 = vmatpush3.bf16.msra.mxu0 %v3131_v41  ;;  %v2910_v41 = vld [vmem:[#allocation25] ss:$0 sm:$0xff] (!%p2907_p7) }
 0xa04   : > { %3136 = vmatprep.subr.bf16.mxu0 %v3135_v44 }
 0xa07   : > { %3138 = vmatpush3.bf16.msra.mxu0 %v3135_v44 }
 0xa08   : > { %3140 = vmatprep.subr.bf16.mxu0 %v3139_v48 }
 0xa0b   : > { %3142 = vmatpush3.bf16.msra.mxu0 %v3139_v48 }
 0xa0c   : > { %3144 = vmatprep.subr.bf16.mxu0 %v3143_v51 }
 0xa0f   : > { %3146 = vmatpush3.bf16.msra.mxu0 %v3143_v51 }
 0xa10   : > { %3148 = vmatprep.subr.bf16.mxu0 %v3147_v53 }
 0xa13   : > { %3150 = vmatpush3.bf16.msra.mxu0 %v3147_v53 }
 0xa14   : > { %3152 = vmatprep.subr.bf16.mxu0 %v3151_v56 }
 0xa17   : > { %3154 = vmatpush3.bf16.msra.mxu0 %v3151_v56 }
 0xad1   : > { %v3045_v59 = vpop.f32.mrb[2].mxu0 }
 0xad2   : > { %v2100_v61 = vadd.f32 %v3045_v59, %v4768_v6  ;;  %v2090_v62 = vpop.f32.mrb[3].mxu0  ;;  %v3155_v59 = vpack.c.bf16 %v2277_v58, %v2276_v57 }
 0xad3   : > { %v2099_v63 = vadd.f32 %v2090_v62, %v4766_v5 }
 0xad4   : > { %v4870_v0 = vadd.f32 %v2898_v60, %v2100_v61  ;;  %3156 = vmatprep.subr.bf16.mxu0 %v3155_v59 }
 0xad5   : > { %v4872_v1 = vadd.f32 %v2898_v60, %v2099_v63  ;;  %3158 = vmatpush3.bf16.msra.mxu0 %v3155_v59  ;;  %v2901_v60 = vld [vmem:[%s974_s25] ss:$0 sm:$0xff] }
 0xad6   : > { %v2115_v2 = vsel %vm1135_vm2, %v4870_v0, 0.0 }
 0xad7   : > { %2116 = vadd.xlane.f32.xlu0 %v2115_v2  ;;  %v2112_v3 = vsel %vm1135_vm2, %v4872_v1, 0.0 }
 0xad8   : > { %2113 = vadd.xlane.f32.xlu1 %v2112_v3 }
 0xb64   : > { %v2117_v4 = vpop.xlane.xlu0 %2116 }
 0xb65   : > { %v2119_v6 = vmul.f32 0.03125, %v2117_v4  ;;  %v2114_v7 = vpop.xlane.xlu1 %2113 }
 0xb66   : > { %v2118_v5 = vmul.f32 0.03125, %v2114_v7 }
 0xb67   : > { %v2121_v8 = vsub.f32 %v4870_v0, %v2119_v6 }
 0xb68   : > { %v2120_v9 = vsub.f32 %v4872_v1, %v2118_v5 }
 0xb69   : > { %v2123_v10 = vmul.f32 %v2121_v8, %v2121_v8 }
 0xb6a   : > { %v2122_v11 = vmul.f32 %v2120_v9, %v2120_v9 }
 0xb6b   : > { %v2127_v12 = vsel %vm1135_vm2, %v2123_v10, 0.0 }
 0xb6c   : > { %2128 = vadd.xlane.f32.xlu1 %v2127_v12  ;;  %v2124_v13 = vsel %vm1135_vm2, %v2122_v11, 0.0 }
 0xb6d   : > { %2125 = vadd.xlane.f32.xlu0 %v2124_v13 }
 0xbf9   : > { %v2129_v20 = vpop.xlane.xlu1 %2128 }
 0xbfa   : > { %v2131_v21 = vmul.f32 0.03125, %v2129_v20  ;;  %v2126_v22 = vpop.xlane.xlu0 %2125 }
 0xbfb   : > { %v2130_v23 = vmul.f32 0.03125, %v2126_v22 }
 0xbfc   : > { %v2133_v24 = vadd.f32 1e-05, %v2131_v21 }
 0xbfd   : > { %v2132_v25 = vadd.f32 1e-05, %v2130_v23 }
 0xbfe   : > { %3322 = vrsqrt.f32 %v2133_v24 }
 0xbff   : > { %3324 = vrsqrt.f32 %v2132_v25 }
 0xc08   : > { %v3323_v26 = vpop.eup %3322 }
 0xc09   : > { %v3325_v28 = vpop.eup %3324  ;;  %v2137_v29 = vmul.f32 %v3323_v26, %v2121_v8 }
 0xc0a   : > { %v2136_v30 = vmul.f32 %v3325_v28, %v2120_v9 }
 0xc0b   : > { %v2145_v32 = vmul.f32 %v2899_v27, %v2137_v29  ;;  %v2409_v29 = vld [vmem:[#allocation28] sm:$0xff] (!%p2907_p7) }
 0xc0c   : > { %v2144_v33 = vmul.f32 %v2899_v27, %v2136_v30  ;;  %v2410_v30 = vld [vmem:[#allocation28 + $0x8] sm:$0xff] (!%p2907_p7) }
 0xc0d   : > { %v2153_v35 = vadd.f32 %v2900_v31, %v2145_v32  ;;  %v3995_v32 = vmov (!%p2907_p7), 0.0|0.0  }
 0xc0e   : > { %v2152_v34 = vadd.f32 %v2900_v31, %v2144_v33  ;;  %v2411_v31 = vld [vmem:[#allocation28 + $0x10] sm:$0xff] (!%p2907_p7)  ;;  %3159 = vmatprep.subr.bf16.mxu0 (!%p2907_p7), %v3995_v32  ;;  %v3160_v33 = vpack.c.bf16 (!%p2907_p7), %v2410_v30, %v2409_v29 }
 0xc10   : > { %3054 = vmatprep.mubr.msk.f32.mxu1 %vm1135_vm2, %v2152_v34  ;;  %v2412_v34 = vld [vmem:[#allocation28 + $0x18] sm:$0xff] (!%p2907_p7) }
 0xc11   : > { %3055 = vmatmul.mubr.msk.f32.vlgmr.msra.gmra.mrb[16].mxu1 %vm1135_vm2, %v2153_v35  ;;  %v3997_v35 = vmov (!%p2907_p7), 0.0   ;;  %v3163_v36 = vpack.c.bf16 (!%p2907_p7), %v2412_v34, %v2411_v31 }
 0xce4   : > { %v3056_v61 = vpop.f32.mrb[16].mxu1 }
 0xce5   : > { %v2243_v62 = vadd.f32 %v3056_v61, %v2901_v60  ;;  %v2237_v63 = vpop.f32.mrb[17].mxu1 }
 0xce6   : > { %v2238_v2 = vadd.f32 %v2901_v60, %v2237_v63 }
 0xce7   : > { %v2905_v3 = vmul.f32 -1.702, %v2243_v62 }
 0xce8   : > { %v2904_v4 = vmul.f32 -1.702, %v2238_v2 }
 0xce9   : > { %v2252_v6 = vmul.f32 1.442695, %v2905_v3 }
 0xcea   : > { %v2250_v7 = vmul.f32 1.442695, %v2904_v4 }
 0xceb   : > { %3326 = vpow2.f32 %v2252_v6 }
 0xcec   : > { %3328 = vpow2.f32 %v2250_v7 }
 0xcf5   : > { %v3327_v5 = vpop.eup %3326 }
 0xcf6   : > { %v3329_v8 = vpop.eup %3328  ;;  %v2255_v9 = vadd.f32 1.0, %v3327_v5 }
 0xcf7   : > { %v2254_v10 = vadd.f32 1.0, %v3329_v8 }
 0xcf8   : > { %3330 = vrcp.f32 %v2255_v9 }
 0xcf9   : > { %3332 = vrcp.f32 %v2254_v10 }
 0xd02   : > { %v3331_v11 = vpop.eup %3330 }
 0xd03   : > { %v3333_v12 = vpop.eup %3332  ;;  %v2261_v14 = vmul.f32 %v3331_v11, %v2243_v62 }
 0xd04   : > { %v2260_v13 = vmul.f32 %v3333_v12, %v2238_v2 }
 0xd06   : > { %3089 = vmatprep.mubr.f32.mxu0 %v2260_v13 }
 0xd07   : > { %3090 = vmatmul.mubr.f32.vlgmr.msra.gmra.mrb[4].mxu0 %v2261_v14 }
 0xd08   : > { %3100 = vmatprep.mubr.msk.f32.mxu0 (!%p2907_p7), %vm3996_vm8, %v3997_v35  ;;  %3161 = vmatpush3.bf16.msra.mxu0 (!%p2907_p7), %v3160_v33 }
 0xd09   : > { %3162 = vmatprep.subr.bf16.mxu0 (!%p2907_p7), %v3995_v32 }
 0xd0c   : > { %3164 = vmatpush3.bf16.msra.mxu0 (!%p2907_p7), %v3163_v36 }
 0xdda   : > { %v3091_v16 = vpop.f32.mrb[4].mxu0  ;;  %2367 = sbr.rel (%p2907_p7) target bundleno = 4094 (0xffe), region = 184 }
 0xddb   : > { %v2357_v17 = vadd.f32 %v3091_v16, %v2906_v15  ;;  %v2351_v18 = vpop.f32.mrb[5].mxu0 }
 0xddc   : > { %v2352_v19 = vadd.f32 %v2906_v15, %v2351_v18 }
 0xddd   : > { %v2361_v20 = vadd.f32 %v2357_v17, %v4870_v0 }
 0xdde   : > { %v2360_v21 = vadd.f32 %v2352_v19, %v4872_v1 }
 0xddf   : > { %2363 = vst.msk [vmem:[#allocation2 + $0x8] sm:$0xff] %vm1135_vm2, %v2361_v20 }
 0xde0   : > { %2362 = vst.msk [vmem:[#allocation2] sm:$0xff] %vm1135_vm2, %v2360_v21 }
 0xde7   : > { %v2370_v22 = vld [vmem:[%s2369_s7] sm:$0x1]  ;;  %v2909_v23 = vld [vmem:[%s2646_s20 + $0x8] sm:$0x1] }
 0xde8   : > { %2372 = vst.msk [vmem:[#allocation3] sm:$0x1] %vm2371_vm6, %v2370_v22  ;;  %2377 = vst.msk [vmem:[#allocation3 + $0x1] sm:$0x1] %vm2371_vm6, %v2909_v23 }
 0xdef   : > { %v2378_v0 = vld [vmem:[#allocation3] sm:$0x3] }
 0xdf0   : > { %v2382_v1 = vsel %vm2381_vm7, %v2378_v0, 0.0 }
 0xdf1   : > { %2383 = vadd.xlane.f32.xlu0 %v2382_v1 }
 0xe7e   : > { %v2384_v24 = vpop.xlane.xlu0 %2383 }
 0xe7f   : > { %v2385_v25 = vmul.f32 0.03125, %v2384_v24 }
 0xe81   : > { %v2386_v26 = vsub.f32 %v2378_v0, %v2385_v25 }
 0xe83   : > { %v2387_v27 = vmul.f32 %v2386_v26, %v2386_v26 }
 0xe85   : > { %v2388_v28 = vsel %vm2381_vm7, %v2387_v27, 0.0 }
 0xe86   : > { %2389 = vadd.xlane.f32.xlu0 %v2388_v28 }
 0xf13   : > { %v2390_v37 = vpop.xlane.xlu0 %2389 }
 0xf14   : > { %v2391_v38 = vmul.f32 0.03125, %v2390_v37 }
 0xf16   : > { %v2392_v39 = vadd.f32 1e-05, %v2391_v38 }
 0xf18   : > { %3334 = vrsqrt.f32 %v2392_v39 }
 0xf22   : > { %v3335_v40 = vpop.eup %3334 }
 0xf23   : > { %v2394_v42 = vmul.f32 %v3335_v40, %v2386_v26 }
 0xf25   : > { %v2401_v44 = vmul.f32 %v2910_v41, %v2394_v42 }
 0xf27   : > { %v2408_v45 = vadd.f32 %v2911_v43, %v2401_v44 }
 0xf29   : > { %3101 = vmatmul.mubr.msk.f32.vlgmr.msra.gmra.mrb[0].mxu0 %vm1135_vm2, %v2408_v45 }
 0xffc   : > { %v2482_v47 = vpop.f32.mrb[0].mxu0 }
 0xffd   : > { %2486 = vst.msk [vmem:[#allocation29] sm:$0x3] %vm2381_vm7, %v2482_v47  ;;  %v3102_v48 = vpop.f32.mrb[1].mxu0 }
 0xffe PF: > { %s5074_s18 = sld [smem:[#allocation38_spill]]  ;;  %s3998_s16 = smov [#allocation29]  }
 0xfff   : > { %s2494_s15 = sshll.u32 %s3998_s16, 4  ;;  %s2495_s15 = int_to_ptr.vmem [resolvable:$true] %s2494_s15 }
0x1000   : > { %s3878_s9 = scalar_lea.vmem %s2495_s15, 32  ;;  %p3885_p4 = scmp.lt.s32.totalorder %s2495_s15, %s2495_s15 }
0x1001   : > { %p3879_p13 = scmp.ne.s32.totalorder %s2495_s15, %s3878_s9  ;;  %p3886_p10 = scmp.lt.s32.totalorder %s3878_s9, %s3878_s9 }
0x1003   : > { %p3887_p3 = por %p3886_p10, %p3885_p4 }
0x1004   : > { %p3245_p6 = scmp.eq.s32.totalorder %s5074_s18, 2 }
0x1006   : > { %p3880_p12 = pnand %p3879_p13, %p3245_p6 }
0x1008   : > { %p3881_p9 = pneg %p3880_p12 }
0x100a   : > { %p3888_p0 = pnand %p3887_p3, %p3881_p9 }
0x100c   : > { %3891 = shalt.err (!%p3888_p0)
}
0x100d   : > { %s5075_s25 = sld [smem:[#allocation58_spill]] }
0x1013   : > { %s3892_s13 = scalar_lea.hbm %s5075_s25, 32 }
0x1014   : > { %p3893_p1 = scmp.ne.s32.totalorder %s5075_s25, %s3892_s13  ;;  %p3898_p5 = scmp.lt.u32.totalorder %s3892_s13, %s5075_s25 }
0x1016   : > { %p3894_p2 = pnand %p3893_p1, %p3245_p6 }
0x1018   : > { %p3895_p8 = pneg %p3894_p2 }
0x101a   : > { %p3900_p11 = pnand %p3898_p5, %p3895_p8 }
0x101c   : > { %3903 = shalt.err (!%p3900_p11)
}
0x101d   : > { %3216 = dma.vmem_to_hbm [thread:$0]  (%p3245_p6), %s2495_s15, 32, %s5075_s25, [#allocation8]  }
0x101e   : > { %3943 = dma.done.wait (%p3245_p6), [#allocation8], 32  }
0x101f   : > { %3945 = vsyncadd (%p3245_p6), [#allocation8], 4294967264 }
0x1020 PF: > { %s5076_s14 = sld [smem:[#allocation39_spill]]  ;;  %s5077_s4 = sld [smem:[#allocation37_spill]] }
0x1021   : > { %s5078_s22 = sld [smem:[#allocation40_spill]]  ;;  %s5079_s29 = smov %s3956_s30 }
0x1026   : > { %p35_p7 = scmp.ge.s32.totalorder %s5076_s14, 5  }
0x1027   : > { %s5080_s30 = smov %s5078_s22 }
0x1028   :  { %37 = sbr.rel (!%p35_p7) target bundleno = 29 (0x1d), region = 309 }
0x102f   :  { %2507 = vsyncpa [#allocation7], 1 }
0x1030   :  { %2509 = vsyncpa [#allocation7 + $0x1], 1 }
0x1031   :  { %2510 = vsyncpa [#allocation10], 1 }
0x1032   :  { %2511 = vsyncpa [#allocation27], 1 }
0x1033   :  { %2512 = vsyncpa [#allocation8], 1 }
0x1034   :  { %2514 = vsyncpa [#allocation8 + $0x1], 1 }

</bundles_post_ra>
